<compile_context>
chip_gen: v6e
topology: v6e:2x2x1
jax: 0.10.0
libtpu: 0.0.40
codegen_flags: <defaults>
</compile_context>

<pallas_src>
import functools
import math

import jax
import jax.numpy as jnp
from jax.experimental import pallas as pl
from jax.experimental.pallas import tpu as pltpu


def _detect_vmem_limit():
    """~75% of physical VMEM, capped at 100 MiB (v5e/v6e: 96 MiB, v7x: 48 MiB)."""
    try:
        cap = pltpu.get_tpu_info().vmem_capacity_bytes
        return min(int(cap * 3 // 4), 100 * 1024 * 1024)
    except Exception:
        return 48 * 1024 * 1024  # conservative: fits v7x's 64 MiB VMEM


_VMEM_LIMIT = _detect_vmem_limit()
_BIG_VMEM = _VMEM_LIMIT > 64 * 1024 * 1024
_BLOCK_M = 512 if _BIG_VMEM else 256
_BLOCK_N = 512 if _BIG_VMEM else 256
_BLOCK_K = 1024 if _BIG_VMEM else 512


def _tile(dim, want, align=8):
    """Largest aligned divisor of dim that is <= want (full dim if dim <= want)."""
    if dim <= want:
        return dim
    if dim % want == 0:
        return want
    t = (want // align) * align
    while t >= align:
        if dim % t == 0:
            return t
        t -= align
    # TODO(synk): pad M/N/K to the (8,128) quantum instead of one oversized block.
    return dim


# ----------------------------- Pallas kernels -----------------------------

def _ln_matmul_kernel(x_ref, g_ref, b_ref, w_ref, bias_ref, o_ref, xn_ref,
                      *, eps, activation):
    """LayerNorm prologue (computed once per row tile, cached in VMEM scratch)
    fused with a bf16 MXU matmul + bias (+ optional ReLU) epilogue."""
    j = pl.program_id(1)

    @pl.when(j == 0)
    def _ln():
        x = x_ref[...]                                        # (TM, K) f32
        mean = jnp.mean(x, axis=-1, keepdims=True)
        d = x - mean
        var = jnp.sum(d * d, axis=-1, keepdims=True) / (x.shape[-1] - 1)
        inv = 1.0 / (jnp.sqrt(var) + eps)                     # exact (LN path)
        xn_ref[...] = (g_ref[...] * (d * inv) + b_ref[...]).astype(jnp.bfloat16)

    y = jnp.dot(xn_ref[...], w_ref[...],
                preferred_element_type=jnp.float32) + bias_ref[...]
    if activation == "relu":
        y = jnp.maximum(y, 0.0)
    o_ref[...] = y.astype(o_ref.dtype)


def _matmul_bias_kernel(x_ref, w_ref, bias_ref, *rest, activation, has_residual):
    """Tiled matmul with f32 accumulator; bias / activation / residual epilogue."""
    if has_residual:
        res_ref, o_ref, acc_ref = rest
    else:
        o_ref, acc_ref = rest

    k = pl.program_id(2)

    @pl.when(k == 0)
    def _init():
        acc_ref[...] = jnp.zeros_like(acc_ref)

    # astype is a no-op when the caller already supplies bf16 activations.
    acc_ref[...] += jnp.dot(x_ref[...].astype(jnp.bfloat16), w_ref[...],
                            preferred_element_type=jnp.float32)

    @pl.when(k == pl.num_programs(2) - 1)
    def _finalize():
        y = acc_ref[...] + bias_ref[...]
        if activation == "relu":
            y = jnp.maximum(y, 0.0)
        if has_residual:
            y = y + res_ref[...]
        o_ref[...] = y.astype(o_ref.dtype)


def _ffn_kernel(x_ref, g_ref, b_ref, w1_ref, b1_ref, w2_ref, b2_ref, o_ref,
                xn_ref, acc_ref, *, eps):
    """Fused FFN sublayer: out = x + ReLU(LN(x) @ w1 + b1) @ w2 + b2.
    d_ff is the inner 'arbitrary' grid axis; the hidden tile never leaves VMEM."""
    f = pl.program_id(1)

    @pl.when(f == 0)
    def _init():
        x = x_ref[...]                                        # (TM, D) f32
        mean = jnp.mean(x, axis=-1, keepdims=True)
        d = x - mean
        var = jnp.sum(d * d, axis=-1, keepdims=True) / (x.shape[-1] - 1)
        inv = 1.0 / (jnp.sqrt(var) + eps)
        xn_ref[...] = (g_ref[...] * (d * inv) + b_ref[...]).astype(jnp.bfloat16)
        acc_ref[...] = jnp.zeros_like(acc_ref)

    h = jnp.dot(xn_ref[...], w1_ref[...],
                preferred_element_type=jnp.float32) + b1_ref[...]
    h = jnp.maximum(h, 0.0)
    acc_ref[...] += jnp.dot(h.astype(jnp.bfloat16), w2_ref[...],
                            preferred_element_type=jnp.float32)

    @pl.when(f == pl.num_programs(1) - 1)
    def _finalize():
        o_ref[...] = (acc_ref[...] + b2_ref[...] + x_ref[...]).astype(o_ref.dtype)


def _attention_kernel(q_ref, kv_ref, mask_ref, o_ref, acc_ref,
                      *, num_heads, q_off, k_off, v_off):
    """One (batch, query-tile) grid step.  q/k/v are static column windows of
    packed projection outputs (no XLA slice copies).  q is pre-scaled by
    1/sqrt(dk) (folded into wq).  mask->additive bias computed once; per-head
    PV results written into a f32 VMEM scratch and stored lane-dense once.
    TODO(synk): for long sequences, add a KV grid axis with flash-style online
    softmax and pair heads (dk=64 -> 128-wide) for better MXU fill."""
    D = o_ref.shape[-1]
    dk = D // num_heads
    bias = jnp.where(mask_ref[...] > 0.0, 0.0, -1e9)          # (Mr, Sk) f32, hoisted

    for h in range(num_heads):
        qh = q_ref[:, q_off + h * dk: q_off + (h + 1) * dk]   # (Tq, dk) bf16
        kh = kv_ref[:, k_off + h * dk: k_off + (h + 1) * dk]  # (Sk, dk) bf16
        vh = kv_ref[:, v_off + h * dk: v_off + (h + 1) * dk]  # (Sk, dk) bf16
        s = jax.lax.dot_general(qh, kh, (((1,), (1,)), ((), ())),
                                preferred_element_type=jnp.float32) + bias
        m = jnp.max(s, axis=-1, keepdims=True)
        e = jnp.exp(s - m)
        p = e * pl.reciprocal(jnp.sum(e, axis=-1, keepdims=True), approx=True)
        acc_ref[:, h * dk:(h + 1) * dk] = jnp.dot(
            p.astype(vh.dtype), vh, preferred_element_type=jnp.float32)

    o_ref[...] = acc_ref[...].astype(o_ref.dtype)             # single dense store


# ----------------------------- kernel wrappers -----------------------------

def ln_matmul(x2d, g, b, w_bf16, bias, *, activation=None, out_dtype=jnp.bfloat16,
              eps=1e-6, block_m=_BLOCK_M, block_n=_BLOCK_N):
    """out = (LayerNorm(x2d; g, b) @ w + bias), optional ReLU.  K kept whole.
    g/b/bias must be pre-reshaped to (1, K)/(1, N); w pre-cast to bf16."""
    M, K = x2d.shape
    N = w_bf16.shape[1]
    tm = _tile(M, block_m)
    tn = _tile(N, block_n, align=128)
    return pl.pallas_call(
        functools.partial(_ln_matmul_kernel, eps=eps, activation=activation),
        out_shape=jax.ShapeDtypeStruct((M, N), out_dtype),
        grid=(M // tm, N // tn),
        in_specs=[pl.BlockSpec((tm, K), lambda i, j: (i, 0)),
                  pl.BlockSpec((1, K), lambda i, j: (0, 0)),
                  pl.BlockSpec((1, K), lambda i, j: (0, 0)),
                  pl.BlockSpec((K, tn), lambda i, j: (0, j)),
                  pl.BlockSpec((1, tn), lambda i, j: (0, j))],
        out_specs=pl.BlockSpec((tm, tn), lambda i, j: (i, j)),
        scratch_shapes=[pltpu.VMEM((tm, K), jnp.bfloat16)],
        compiler_params=pltpu.CompilerParams(
            dimension_semantics=("parallel", "arbitrary"),   # LN cached across j
            vmem_limit_bytes=_VMEM_LIMIT),
    )(x2d, g, b, w_bf16, bias)


def matmul_bias(x2d, w_bf16, bias, *, residual=None, activation=None,
                out_dtype=jnp.float32, block_m=_BLOCK_M, block_n=_BLOCK_N,
                block_k=_BLOCK_K):
    """out = x2d @ w + bias (+ residual), tiled over (M, N, K), f32 accumulator."""
    M, K = x2d.shape
    N = w_bf16.shape[1]
    tm = _tile(M, block_m)
    tn = _tile(N, block_n, align=128)
    tk = _tile(K, block_k, align=128)
    has_res = residual is not None

    in_specs = [pl.BlockSpec((tm, tk), lambda i, j, kk: (i, kk)),
                pl.BlockSpec((tk, tn), lambda i, j, kk: (kk, j)),
                pl.BlockSpec((1, tn), lambda i, j, kk: (0, j))]
    args = [x2d, w_bf16, bias]
    if has_res:
        in_specs.append(pl.BlockSpec((tm, tn), lambda i, j, kk: (i, j)))
        args.append(residual)

    return pl.pallas_call(
        functools.partial(_matmul_bias_kernel, activation=activation,
                          has_residual=has_res),
        out_shape=jax.ShapeDtypeStruct((M, N), out_dtype),
        grid=(M // tm, N // tn, K // tk),
        in_specs=in_specs,
        out_specs=pl.BlockSpec((tm, tn), lambda i, j, kk: (i, j)),
        scratch_shapes=[pltpu.VMEM((tm, tn), jnp.float32)],
        compiler_params=pltpu.CompilerParams(
            dimension_semantics=("parallel", "parallel", "arbitrary"),
            vmem_limit_bytes=_VMEM_LIMIT),
    )(*args)


def ffn_fused(x2d, g, b, w1_bf16, b1, w2_bf16, b2, *, eps=1e-6,
              block_m=_BLOCK_M, block_f=_BLOCK_K):
    """out = x + ReLU(LN(x) @ w1 + b1) @ w2 + b2, hidden kept entirely in VMEM."""
    M, D = x2d.shape
    F = w1_bf16.shape[1]
    tm = _tile(M, block_m)
    tf = _tile(F, block_f, align=128)
    return pl.pallas_call(
        functools.partial(_ffn_kernel, eps=eps),
        out_shape=jax.ShapeDtypeStruct((M, D), jnp.float32),
        grid=(M // tm, F // tf),
        in_specs=[pl.BlockSpec((tm, D), lambda i, f: (i, 0)),
                  pl.BlockSpec((1, D), lambda i, f: (0, 0)),
                  pl.BlockSpec((1, D), lambda i, f: (0, 0)),
                  pl.BlockSpec((D, tf), lambda i, f: (0, f)),
                  pl.BlockSpec((1, tf), lambda i, f: (0, f)),
                  pl.BlockSpec((tf, D), lambda i, f: (f, 0)),
                  pl.BlockSpec((1, D), lambda i, f: (0, 0))],
        out_specs=pl.BlockSpec((tm, D), lambda i, f: (i, 0)),
        scratch_shapes=[pltpu.VMEM((tm, D), jnp.bfloat16),
                        pltpu.VMEM((tm, D), jnp.float32)],
        compiler_params=pltpu.CompilerParams(
            dimension_semantics=("parallel", "arbitrary"),
            vmem_limit_bytes=_VMEM_LIMIT),
    )(x2d, g, b, w1_bf16, b1, w2_bf16, b2)


def multihead_attention(q_src, kv_src, mask, num_heads, D, *, q_off, k_off, v_off):
    """q_src: (B, Sq, Wq) bf16; kv_src: (B, Sk, Wkv) bf16 — packed projections.
    q/k/v are static column windows [*_off, *_off+D).  mask: (B, Mr, Sk) f32,
    Mr in {1, Sq}.  Grid = (B, Sq-tiles) so megacore gets >B parallel blocks."""
    B, Sq, Wq = q_src.shape
    _, Sk, Wkv = kv_src.shape
    Mr = mask.shape[1]
    tq = _tile(Sq, 256, align=8)

    if Mr == 1:
        mask_blk, mask_idx = (None, 1, Sk), (lambda bi, qi: (bi, 0, 0))
    else:
        mask_blk, mask_idx = (None, tq, Sk), (lambda bi, qi: (bi, qi, 0))

    return pl.pallas_call(
        functools.partial(_attention_kernel, num_heads=num_heads,
                          q_off=q_off, k_off=k_off, v_off=v_off),
        out_shape=jax.ShapeDtypeStruct((B, Sq, D), jnp.bfloat16),
        grid=(B, Sq // tq),
        in_specs=[pl.BlockSpec((None, tq, Wq), lambda bi, qi: (bi, qi, 0)),
                  pl.BlockSpec((None, Sk, Wkv), lambda bi, qi: (bi, 0, 0)),
                  pl.BlockSpec(mask_blk, mask_idx)],
        out_specs=pl.BlockSpec((None, tq, D), lambda bi, qi: (bi, qi, 0)),
        scratch_shapes=[pltpu.VMEM((tq, D), jnp.float32)],
        compiler_params=pltpu.CompilerParams(
            dimension_semantics=("parallel", "parallel"),
            vmem_limit_bytes=_VMEM_LIMIT),
    )(q_src, kv_src, mask)


# ----------------------------- param preparation -----------------------------

def prepare_params(params, num_heads):
    """One-time weight prep: concat wqkv/wkv, fold 1/sqrt(dk) into wq/bq,
    cast all weight matrices to bf16, reshape biases / LN params to (1, N)."""
    D = params["ln0_g"].shape[0]
    scale = 1.0 / math.sqrt(D // num_heads)
    sa, ca, ffn = params["self_attn"], params["src_attn"], params["ffn"]
    bf = lambda w: w.astype(jnp.bfloat16)
    row = lambda v: v.reshape(1, -1)
    return dict(
        wqkv=bf(jnp.concatenate([sa["wq"] * scale, sa["wk"], sa["wv"]], axis=1)),
        bqkv=row(jnp.concatenate([sa["bq"] * scale, sa["bk"], sa["bv"]])),
        sa_wo=bf(sa["wo"]), sa_bo=row(sa["bo"]),
        ca_wq=bf(ca["wq"] * scale), ca_bq=row(ca["bq"] * scale),
        wkv=bf(jnp.concatenate([ca["wk"], ca["wv"]], axis=1)),
        bkv=row(jnp.concatenate([ca["bk"], ca["bv"]])),
        ca_wo=bf(ca["wo"]), ca_bo=row(ca["bo"]),
        w1=bf(ffn["w1"]), b1=row(ffn["b1"]),
        w2=bf(ffn["w2"]), b2=row(ffn["b2"]),
        ln0_g=row(params["ln0_g"]), ln0_b=row(params["ln0_b"]),
        ln1_g=row(params["ln1_g"]), ln1_b=row(params["ln1_b"]),
        ln2_g=row(params["ln2_g"]), ln2_b=row(params["ln2_b"]),
    )


# ----------------------------- DecoderLayer forward -----------------------------

def decoder_layer_forward(prep, x, memory, src_mask, tgt_mask, num_heads):
    """x: (B, S_tgt, D); memory: (B, S_src, D);
       src_mask: (B, 1, S_src); tgt_mask: (B, S_tgt, S_tgt)."""
    B, S, D = x.shape
    Sm = memory.shape[1]
    x2 = x.reshape(-1, D)                     # residual stream, f32 throughout
    src_m = src_mask.astype(jnp.float32)
    tgt_m = tgt_mask.astype(jnp.float32)
    # TODO(synk): nn.Dropout is a training-time stochastic op; identity here.
    # TODO(synk): masks could be shipped as int8 / generated in-kernel (iota) to
    # cut mask HBM traffic for long sequences.

    # ---- sublayer 0: x = x + self_attn(LN(x), LN(x), LN(x), tgt_mask) ----
    qkv = ln_matmul(x2, prep["ln0_g"], prep["ln0_b"], prep["wqkv"], prep["bqkv"])
    qkv3 = qkv.reshape(B, S, 3 * D)           # free reshape, no slice copies
    attn = multihead_attention(qkv3, qkv3, tgt_m, num_heads, D,
                               q_off=0, k_off=D, v_off=2 * D)
    x2 = matmul_bias(attn.reshape(-1, D), prep["sa_wo"], prep["sa_bo"], residual=x2)

    # ---- sublayer 1: x = x + src_attn(LN(x), memory, memory, src_mask) ----
    qp = ln_matmul(x2, prep["ln1_g"], prep["ln1_b"], prep["ca_wq"],
                   prep["ca_bq"]).reshape(B, S, D)
    mem_bf = memory.reshape(-1, D).astype(jnp.bfloat16)   # cast once, pre-call
    kv = matmul_bias(mem_bf, prep["wkv"], prep["bkv"],
                     out_dtype=jnp.bfloat16).reshape(B, Sm, 2 * D)
    attn = multihead_attention(qp, kv, src_m, num_heads, D,
                               q_off=0, k_off=0, v_off=D)
    x2 = matmul_bias(attn.reshape(-1, D), prep["ca_wo"], prep["ca_bo"], residual=x2)

    # ---- sublayer 2: x = x + W2 @ relu(W1 @ LN(x) + b1) + b2 (single fused call) ----
    x2 = ffn_fused(x2, prep["ln2_g"], prep["ln2_b"], prep["w1"], prep["b1"],
                   prep["w2"], prep["b2"])
    return x2.reshape(B, S, D)


# ----------------------------- pure-JAX reference -----------------------------

def ref_forward(params, x, memory, src_mask, tgt_mask, num_heads):
    HI = jax.lax.Precision.HIGHEST

    def ln(t, g, b, eps=1e-6):
        mean = jnp.mean(t, -1, keepdims=True)
        d = t - mean
        var = jnp.sum(d * d, -1, keepdims=True) / (t.shape[-1] - 1)
        return g * d / (jnp.sqrt(var) + eps) + b

    def lin(t, w, b):
        return jnp.dot(t, w, precision=HI) + b

    def mha(p, qin, kvin, mask):
        B, Sq, D = qin.shape
        Sk = kvin.shape[1]
        dk = D // num_heads
        q = lin(qin, p["wq"], p["bq"]).reshape(B, Sq, num_heads, dk).transpose(0, 2, 1, 3)
        k = lin(kvin, p["wk"], p["bk"]).reshape(B, Sk, num_heads, dk).transpose(0, 2, 1, 3)
        v = lin(kvin, p["wv"], p["bv"]).reshape(B, Sk, num_heads, dk).transpose(0, 2, 1, 3)
        s = jnp.einsum("bhqd,bhkd->bhqk", q, k, precision=HI) / math.sqrt(dk)
        s = jnp.where(mask[:, None, :, :] > 0, s, -1e9)
        a = jax.nn.softmax(s, axis=-1)
        o = jnp.einsum("bhqk,bhkd->bhqd", a, v, precision=HI)
        return lin(o.transpose(0, 2, 1, 3).reshape(B, Sq, D), p["wo"], p["bo"])

    B, S, D = x.shape
    Sm = memory.shape[1]
    xn = ln(x, params["ln0_g"], params["ln0_b"])
    x = x + mha(params["self_attn"], xn, xn,
                jnp.broadcast_to(tgt_mask.astype(jnp.float32), (B, S, S)))
    xn = ln(x, params["ln1_g"], params["ln1_b"])
    x = x + mha(params["src_attn"], xn, memory,
                jnp.broadcast_to(src_mask.astype(jnp.float32), (B, S, Sm)))
    xn = ln(x, params["ln2_g"], params["ln2_b"])
    h = jnp.maximum(lin(xn, params["ffn"]["w1"], params["ffn"]["b1"]), 0.0)
    return x + lin(h, params["ffn"]["w2"], params["ffn"]["b2"])


# ----------------------------- params / main -----------------------------

def init_params(key, D, d_ff):
    ks = jax.random.split(key, 4)

    def dense(k, fan_in, fan_out):
        bound = 1.0 / math.sqrt(fan_in)
        kw, kb = jax.random.split(k)
        w = jax.random.uniform(kw, (fan_in, fan_out), jnp.float32, -bound, bound)
        b = jax.random.uniform(kb, (fan_out,), jnp.float32, -bound, bound)
        return w, b

    def attn_params(k):
        kq, kk, kv, ko = jax.random.split(k, 4)
        wq, bq = dense(kq, D, D)
        wk, bk = dense(kk, D, D)
        wv, bv = dense(kv, D, D)
        wo, bo = dense(ko, D, D)
        return dict(wq=wq, bq=bq, wk=wk, bk=bk, wv=wv, bv=bv, wo=wo, bo=bo)

    w1, b1 = dense(ks[2], D, d_ff)
    w2, b2 = dense(ks[3], d_ff, D)
    return dict(
        self_attn=attn_params(ks[0]),
        src_attn=attn_params(ks[1]),
        ffn=dict(w1=w1, b1=b1, w2=w2, b2=b2),
        ln0_g=jnp.ones((D,), jnp.float32), ln0_b=jnp.zeros((D,), jnp.float32),
        ln1_g=jnp.ones((D,), jnp.float32), ln1_b=jnp.zeros((D,), jnp.float32),
        ln2_g=jnp.ones((D,), jnp.float32), ln2_b=jnp.zeros((D,), jnp.float32),
    )


if __name__ == "__main__":
    B, S_TGT, S_SRC, D, H, D_FF = 2, 8, 8, 32, 4, 64
    key = jax.random.PRNGKey(0)
    k_x, k_m, k_p = jax.random.split(key, 3)

    x = jax.random.normal(k_x, (B, S_TGT, D), jnp.float32)
    memory = jax.random.normal(k_m, (B, S_SRC, D), jnp.float32)
    src_mask = jnp.ones((B, 1, S_SRC), jnp.float32)                     # no padding
    tgt_mask = jnp.broadcast_to(
        jnp.tril(jnp.ones((S_TGT, S_TGT), jnp.float32)), (B, S_TGT, S_TGT))  # causal

    params = init_params(k_p, D, D_FF)
    prep = prepare_params(params, H)   # one-time weight concat/scale/bf16 cast

    fwd = jax.jit(functools.partial(decoder_layer_forward, num_heads=H))
    out = jax.block_until_ready(fwd(prep, x, memory, src_mask, tgt_mask))

    ref = ref_forward(params, x, memory, src_mask, tgt_mask, H)
    assert out.shape == (B, S_TGT, D)
    assert bool(jnp.all(jnp.isfinite(out)))
    assert bool(jnp.allclose(out, ref, rtol=5e-2, atol=5e-2))
    print("KERNEL_OK")
</pallas_src>

<mosaic_0001>
module attributes {stable_mosaic.version = 11 : i64} {
  func.func @_matmul_bias_kernel(%arg0: i32, %arg1: i32, %arg2: i32, %arg3: memref<16x32xbf16, #tpu.memory_space<vmem>>, %arg4: memref<32x32xbf16, #tpu.memory_space<vmem>>, %arg5: memref<1x32xf32, #tpu.memory_space<vmem>>, %arg6: memref<16x32xf32, #tpu.memory_space<vmem>>, %arg7: memref<16x32xf32, #tpu.memory_space<vmem>>, %arg8: memref<16x32xf32, #tpu.memory_space<vmem>>) attributes {dimension_semantics = [#tpu.dimension_semantics<parallel>, #tpu.dimension_semantics<parallel>, #tpu.dimension_semantics<arbitrary>], iteration_bounds = array<i64: 1, 1, 1>, scalar_prefetch = 0 : i64, scratch_operands = 1 : i64, tpu.core_type = #tpu.core_type<tc>, window_params = [{transform_indices = @transform_0, window_bounds = array<i64: 16, 32>}, {transform_indices = @transform_1, window_bounds = array<i64: 32, 32>}, {transform_indices = @transform_2, window_bounds = array<i64: 1, 32>}, {transform_indices = @transform_3, window_bounds = array<i64: 16, 32>}, {transform_indices = @transform_4, window_bounds = array<i64: 16, 32>}]} {
    %c0_i32 = arith.constant 0 : i32
    %0 = arith.cmpi eq, %arg2, %c0_i32 : i32
    %1 = arith.extui %0 : i1 to i32
    %c0_i32_0 = arith.constant 0 : i32
    %2 = arith.cmpi ne, %1, %c0_i32_0 : i32
    scf.if %2 {
      %cst_10 = arith.constant 0.000000e+00 : f32
      %12 = vector.broadcast %cst_10 : f32 to vector<16x32xf32>
      %c0_11 = arith.constant 0 : index
      %c0_12 = arith.constant 0 : index
      %13 = vector.load %arg8[%c0_11, %c0_12] : memref<16x32xf32, #tpu.memory_space<vmem>>, vector<16x32xf32>
      tpu.vector_store %arg8[%c0_11, %c0_12], %12 {strides = array<i32>} : memref<16x32xf32, #tpu.memory_space<vmem>>, vector<16x32xf32>,
    } else {
    }
    %c0 = arith.constant 0 : index
    %c0_1 = arith.constant 0 : index
    %3 = vector.load %arg8[%c0, %c0_1] : memref<16x32xf32, #tpu.memory_space<vmem>>, vector<16x32xf32>
    %c0_2 = arith.constant 0 : index
    %c0_3 = arith.constant 0 : index
    %4 = vector.load %arg3[%c0_2, %c0_3] : memref<16x32xbf16, #tpu.memory_space<vmem>>, vector<16x32xbf16>
    %c0_4 = arith.constant 0 : index
    %c0_5 = arith.constant 0 : index
    %5 = vector.load %arg4[%c0_4, %c0_5] : memref<32x32xbf16, #tpu.memory_space<vmem>>, vector<32x32xbf16>
    %cst = arith.constant dense<0.000000e+00> : vector<16x32xf32>
    %6 = tpu.matmul %4, %5, %cst {dimension_numbers = #tpu.dot_dimension_numbers<[1], [0], [0], [1], [0, 0, 1, 1], [], []>} : vector<16x32xbf16>, vector<32x32xbf16>, vector<16x32xf32> -> vector<16x32xf32>
    %7 = arith.addf %3, %6 : vector<16x32xf32>
    %c0_6 = arith.constant 0 : index
    %c0_7 = arith.constant 0 : index
    %8 = vector.load %arg8[%c0_6, %c0_7] : memref<16x32xf32, #tpu.memory_space<vmem>>, vector<16x32xf32>
    tpu.vector_store %arg8[%c0_6, %c0_7], %7 {strides = array<i32>} : memref<16x32xf32, #tpu.memory_space<vmem>>, vector<16x32xf32>,
    %c0_i32_8 = arith.constant 0 : i32
    %9 = arith.cmpi eq, %arg2, %c0_i32_8 : i32
    %10 = arith.extui %9 : i1 to i32
    %c0_i32_9 = arith.constant 0 : i32
    %11 = arith.cmpi ne, %10, %c0_i32_9 : i32
    scf.if %11 {
      %c0_10 = arith.constant 0 : index
      %c0_11 = arith.constant 0 : index
      %12 = vector.load %arg8[%c0_10, %c0_11] : memref<16x32xf32, #tpu.memory_space<vmem>>, vector<16x32xf32>
      %c0_12 = arith.constant 0 : index
      %c0_13 = arith.constant 0 : index
      %13 = vector.load %arg5[%c0_12, %c0_13] : memref<1x32xf32, #tpu.memory_space<vmem>>, vector<1x32xf32>
      %14 = vector.broadcast %13 : vector<1x32xf32> to vector<16x32xf32>
      %15 = arith.addf %12, %14 : vector<16x32xf32>
      %c0_14 = arith.constant 0 : index
      %c0_15 = arith.constant 0 : index
      %16 = vector.load %arg6[%c0_14, %c0_15] : memref<16x32xf32, #tpu.memory_space<vmem>>, vector<16x32xf32>
      %17 = arith.addf %15, %16 : vector<16x32xf32>
      %c0_16 = arith.constant 0 : index
      %c0_17 = arith.constant 0 : index
      %18 = vector.load %arg7[%c0_16, %c0_17] : memref<16x32xf32, #tpu.memory_space<vmem>>, vector<16x32xf32>
      tpu.vector_store %arg7[%c0_16, %c0_17], %17 {strides = array<i32>} : memref<16x32xf32, #tpu.memory_space<vmem>>, vector<16x32xf32>,
    } else {
    }
    return
  }
  func.func @transform_0(%arg0: i32, %arg1: i32, %arg2: i32) -> (i32, i32) {
    %c0_i32 = arith.constant 0 : i32
    return %arg0, %arg2 : i32, i32
  }
  func.func @transform_1(%arg0: i32, %arg1: i32, %arg2: i32) -> (i32, i32) {
    %c0_i32 = arith.constant 0 : i32
    return %arg2, %arg1 : i32, i32
  }
  func.func @transform_2(%arg0: i32, %arg1: i32, %arg2: i32) -> (i32, i32) {
    %c0_i32 = arith.constant 0 : i32
    %c0_i32_0 = arith.constant 0 : i32
    return %c0_i32, %arg1 : i32, i32
  }
  func.func @transform_3(%arg0: i32, %arg1: i32, %arg2: i32) -> (i32, i32) {
    %c0_i32 = arith.constant 0 : i32
    return %arg0, %arg1 : i32, i32
  }
  func.func @transform_4(%arg0: i32, %arg1: i32, %arg2: i32) -> (i32, i32) {
    %c0_i32 = arith.constant 0 : i32
    return %arg0, %arg1 : i32, i32
  }
}

module attributes {stable_mosaic.version = 11 : i64} {
  func.func @_ln_matmul_kernel(%arg0: i32, %arg1: i32, %arg2: memref<16x32xf32, #tpu.memory_space<vmem>>, %arg3: memref<1x32xf32, #tpu.memory_space<vmem>>, %arg4: memref<1x32xf32, #tpu.memory_space<vmem>>, %arg5: memref<32x96xbf16, #tpu.memory_space<vmem>>, %arg6: memref<1x96xf32, #tpu.memory_space<vmem>>, %arg7: memref<16x96xbf16, #tpu.memory_space<vmem>>, %arg8: memref<16x32xbf16, #tpu.memory_space<vmem>>) attributes {dimension_semantics = [#tpu.dimension_semantics<parallel>, #tpu.dimension_semantics<arbitrary>], iteration_bounds = array<i64: 1, 1>, scalar_prefetch = 0 : i64, scratch_operands = 1 : i64, tpu.core_type = #tpu.core_type<tc>, window_params = [{transform_indices = @transform_0, window_bounds = array<i64: 16, 32>}, {pipeline_mode = #tpu.pipeline_mode<synchronous>, transform_indices = @transform_1, window_bounds = array<i64: 1, 32>}, {pipeline_mode = #tpu.pipeline_mode<synchronous>, transform_indices = @transform_2, window_bounds = array<i64: 1, 32>}, {transform_indices = @transform_3, window_bounds = array<i64: 32, 96>}, {transform_indices = @transform_4, window_bounds = array<i64: 1, 96>}, {transform_indices = @transform_5, window_bounds = array<i64: 16, 96>}]} {
    %c0_i32 = arith.constant 0 : i32
    %0 = arith.cmpi eq, %arg1, %c0_i32 : i32
    %1 = arith.extui %0 : i1 to i32
    %c0_i32_0 = arith.constant 0 : i32
    %2 = arith.cmpi ne, %1, %c0_i32_0 : i32
    scf.if %2 {
      %c0_8 = arith.constant 0 : index
      %c0_9 = arith.constant 0 : index
      %11 = vector.load %arg2[%c0_8, %c0_9] : memref<16x32xf32, #tpu.memory_space<vmem>>, vector<16x32xf32>
      %cst_10 = arith.constant dense<0.000000e+00> : vector<16xf32>
      %12 = vector.multi_reduction <add>, %11, %cst_10 [1] : vector<16x32xf32> to vector<16xf32>
      %13 = vector.shape_cast %12 : vector<16xf32> to vector<16x1xf32>
      %cst_11 = arith.constant 3.200000e+01 : f32
      %14 = vector.broadcast %cst_11 : f32 to vector<16x1xf32>
      %15 = arith.divf %13, %14 : vector<16x1xf32>
      %16 = vector.broadcast %15 : vector<16x1xf32> to vector<16x32xf32>
      %17 = arith.subf %11, %16 : vector<16x32xf32>
      %18 = arith.mulf %17, %17 : vector<16x32xf32>
      %cst_12 = arith.constant dense<0.000000e+00> : vector<16xf32>
      %19 = vector.multi_reduction <add>, %18, %cst_12 [1] : vector<16x32xf32> to vector<16xf32>
      %20 = vector.shape_cast %19 : vector<16xf32> to vector<16x1xf32>
      %cst_13 = arith.constant 3.100000e+01 : f32
      %21 = vector.broadcast %cst_13 : f32 to vector<16x1xf32>
      %22 = arith.divf %20, %21 : vector<16x1xf32>
      %23 = math.sqrt %22 : vector<16x1xf32>
      %cst_14 = arith.constant 9.99999997E-7 : f32
      %24 = vector.broadcast %cst_14 : f32 to vector<16x1xf32>
      %25 = arith.addf %23, %24 : vector<16x1xf32>
      %cst_15 = arith.constant 1.000000e+00 : f32
      %26 = vector.broadcast %cst_15 : f32 to vector<16x1xf32>
      %27 = arith.divf %26, %25 : vector<16x1xf32>
      %c0_16 = arith.constant 0 : index
      %c0_17 = arith.constant 0 : index
      %28 = vector.load %arg3[%c0_16, %c0_17] : memref<1x32xf32, #tpu.memory_space<vmem>>, vector<1x32xf32>
      %29 = vector.broadcast %27 : vector<16x1xf32> to vector<16x32xf32>
      %30 = arith.mulf %17, %29 : vector<16x32xf32>
      %31 = vector.broadcast %28 : vector<1x32xf32> to vector<16x32xf32>
      %32 = arith.mulf %31, %30 : vector<16x32xf32>
      %c0_18 = arith.constant 0 : index
      %c0_19 = arith.constant 0 : index
      %33 = vector.load %arg4[%c0_18, %c0_19] : memref<1x32xf32, #tpu.memory_space<vmem>>, vector<1x32xf32>
      %34 = vector.broadcast %33 : vector<1x32xf32> to vector<16x32xf32>
      %35 = arith.addf %32, %34 : vector<16x32xf32>
      %36 = arith.truncf %35 : vector<16x32xf32> to vector<16x32xbf16>
      %c0_20 = arith.constant 0 : index
      %c0_21 = arith.constant 0 : index
      %37 = vector.load %arg8[%c0_20, %c0_21] : memref<16x32xbf16, #tpu.memory_space<vmem>>, vector<16x32xbf16>
      tpu.vector_store %arg8[%c0_20, %c0_21], %36 {strides = array<i32>} : memref<16x32xbf16, #tpu.memory_space<vmem>>, vector<16x32xbf16>,
    } else {
    }
    %c0 = arith.constant 0 : index
    %c0_1 = arith.constant 0 : index
    %3 = vector.load %arg8[%c0, %c0_1] : memref<16x32xbf16, #tpu.memory_space<vmem>>, vector<16x32xbf16>
    %c0_2 = arith.constant 0 : index
    %c0_3 = arith.constant 0 : index
    %4 = vector.load %arg5[%c0_2, %c0_3] : memref<32x96xbf16, #tpu.memory_space<vmem>>, vector<32x96xbf16>
    %cst = arith.constant dense<0.000000e+00> : vector<16x96xf32>
    %5 = tpu.matmul %3, %4, %cst {dimension_numbers = #tpu.dot_dimension_numbers<[1], [0], [0], [1], [0, 0, 1, 1], [], []>} : vector<16x32xbf16>, vector<32x96xbf16>, vector<16x96xf32> -> vector<16x96xf32>
    %c0_4 = arith.constant 0 : index
    %c0_5 = arith.constant 0 : index
    %6 = vector.load %arg6[%c0_4, %c0_5] : memref<1x96xf32, #tpu.memory_space<vmem>>, vector<1x96xf32>
    %7 = vector.broadcast %6 : vector<1x96xf32> to vector<16x96xf32>
    %8 = arith.addf %5, %7 : vector<16x96xf32>
    %9 = arith.truncf %8 : vector<16x96xf32> to vector<16x96xbf16>
    %c0_6 = arith.constant 0 : index
    %c0_7 = arith.constant 0 : index
    %10 = vector.load %arg7[%c0_6, %c0_7] : memref<16x96xbf16, #tpu.memory_space<vmem>>, vector<16x96xbf16>
    tpu.vector_store %arg7[%c0_6, %c0_7], %9 {strides = array<i32>} : memref<16x96xbf16, #tpu.memory_space<vmem>>, vector<16x96xbf16>,
    return
  }
  func.func @transform_0(%arg0: i32, %arg1: i32) -> (i32, i32) {
    %c0_i32 = arith.constant 0 : i32
    %c0_i32_0 = arith.constant 0 : i32
    return %arg0, %c0_i32 : i32, i32
  }
  func.func @transform_1(%arg0: i32, %arg1: i32) -> (i32, i32) {
    %c0_i32 = arith.constant 0 : i32
    %c0_i32_0 = arith.constant 0 : i32
    %c0_i32_1 = arith.constant 0 : i32
    return %c0_i32, %c0_i32_0 : i32, i32
  }
  func.func @transform_2(%arg0: i32, %arg1: i32) -> (i32, i32) {
    %c0_i32 = arith.constant 0 : i32
    %c0_i32_0 = arith.constant 0 : i32
    %c0_i32_1 = arith.constant 0 : i32
    return %c0_i32, %c0_i32_0 : i32, i32
  }
  func.func @transform_3(%arg0: i32, %arg1: i32) -> (i32, i32) {
    %c0_i32 = arith.constant 0 : i32
    %c0_i32_0 = arith.constant 0 : i32
    return %c0_i32, %arg1 : i32, i32
  }
  func.func @transform_4(%arg0: i32, %arg1: i32) -> (i32, i32) {
    %c0_i32 = arith.constant 0 : i32
    %c0_i32_0 = arith.constant 0 : i32
    return %c0_i32, %arg1 : i32, i32
  }
  func.func @transform_5(%arg0: i32, %arg1: i32) -> (i32, i32) {
    %c0_i32 = arith.constant 0 : i32
    return %arg0, %arg1 : i32, i32
  }
}

module attributes {stable_mosaic.version = 11 : i64} {
  func.func @_attention_kernel(%arg0: i32, %arg1: i32, %arg2: memref<1x8x96xbf16, #tpu.memory_space<vmem>>, %arg3: memref<1x8x96xbf16, #tpu.memory_space<vmem>>, %arg4: memref<1x8x8xf32, #tpu.memory_space<vmem>>, %arg5: memref<1x8x32xbf16, #tpu.memory_space<vmem>>, %arg6: memref<8x32xf32, #tpu.memory_space<vmem>>) attributes {dimension_semantics = [#tpu.dimension_semantics<parallel>, #tpu.dimension_semantics<parallel>], iteration_bounds = array<i64: 2, 1>, scalar_prefetch = 0 : i64, scratch_operands = 1 : i64, tpu.core_type = #tpu.core_type<tc>, window_params = [{transform_indices = @transform_0, window_bounds = array<i64: 1, 8, 96>}, {transform_indices = @transform_1, window_bounds = array<i64: 1, 8, 96>}, {transform_indices = @transform_2, window_bounds = array<i64: 1, 8, 8>}, {transform_indices = @transform_3, window_bounds = array<i64: 1, 8, 32>}]} {
    %c0 = arith.constant 0 : index
    %c0_0 = arith.constant 0 : index
    %c0_1 = arith.constant 0 : index
    %0 = vector.load %arg4[%c0, %c0_0, %c0_1] : memref<1x8x8xf32, #tpu.memory_space<vmem>>, vector<1x8x8xf32>
    %1 = vector.shape_cast %0 : vector<1x8x8xf32> to vector<8x8xf32>
    %cst = arith.constant 0.000000e+00 : f32
    %2 = vector.broadcast %cst : f32 to vector<8x8xf32>
    %3 = arith.cmpf ogt, %1, %2 : vector<8x8xf32>
    %cst_2 = arith.constant 0.000000e+00 : f32
    %cst_3 = arith.constant -1.000000e+09 : f32
    %4 = vector.broadcast %cst_2 : f32 to vector<8x8xf32>
    %5 = vector.broadcast %cst_3 : f32 to vector<8x8xf32>
    %6 = arith.select %3, %4, %5 : vector<8x8xi1>, vector<8x8xf32>
    %c0_4 = arith.constant 0 : index
    %c0_5 = arith.constant 0 : index
    %c0_6 = arith.constant 0 : index
    %7 = vector.load %arg2[%c0_4, %c0_5, %c0_6] : memref<1x8x96xbf16, #tpu.memory_space<vmem>>, vector<1x8x8xbf16>
    %8 = vector.shape_cast %7 : vector<1x8x8xbf16> to vector<8x8xbf16>
    %c0_7 = arith.constant 0 : index
    %c0_8 = arith.constant 0 : index
    %c32 = arith.constant 32 : index
    %9 = vector.load %arg3[%c0_7, %c0_8, %c32] : memref<1x8x96xbf16, #tpu.memory_space<vmem>>, vector<1x8x8xbf16>
    %10 = vector.shape_cast %9 : vector<1x8x8xbf16> to vector<8x8xbf16>
    %c0_9 = arith.constant 0 : index
    %c0_10 = arith.constant 0 : index
    %c64 = arith.constant 64 : index
    %11 = vector.load %arg3[%c0_9, %c0_10, %c64] : memref<1x8x96xbf16, #tpu.memory_space<vmem>>, vector<1x8x8xbf16>
    %12 = vector.shape_cast %11 : vector<1x8x8xbf16> to vector<8x8xbf16>
    %cst_11 = arith.constant dense<0.000000e+00> : vector<8x8xf32>
    %13 = tpu.matmul %8, %10, %cst_11 {dimension_numbers = #tpu.dot_dimension_numbers<[1], [1], [0], [0], [0, 0, 1, 0], [], []>} : vector<8x8xbf16>, vector<8x8xbf16>, vector<8x8xf32> -> vector<8x8xf32>
    %14 = arith.addf %13, %6 : vector<8x8xf32>
    %cst_12 = arith.constant dense<0xFF800000> : vector<8xf32>
    %15 = vector.multi_reduction <maximumf>, %14, %cst_12 [1] : vector<8x8xf32> to vector<8xf32>
    %16 = vector.shape_cast %15 : vector<8xf32> to vector<8x1xf32>
    %17 = vector.broadcast %16 : vector<8x1xf32> to vector<8x8xf32>
    %18 = arith.subf %14, %17 : vector<8x8xf32>
    %19 = math.exp %18 : vector<8x8xf32>
    %cst_13 = arith.constant dense<0.000000e+00> : vector<8xf32>
    %20 = vector.multi_reduction <add>, %19, %cst_13 [1] : vector<8x8xf32> to vector<8xf32>
    %21 = vector.shape_cast %20 : vector<8xf32> to vector<8x1xf32>
    %22 = tpu.reciprocal %21 {approx = true} : vector<8x1xf32> -> vector<8x1xf32>
    %23 = vector.broadcast %22 : vector<8x1xf32> to vector<8x8xf32>
    %24 = arith.mulf %19, %23 : vector<8x8xf32>
    %25 = arith.truncf %24 : vector<8x8xf32> to vector<8x8xbf16>
    %cst_14 = arith.constant dense<0.000000e+00> : vector<8x8xf32>
    %26 = tpu.matmul %25, %12, %cst_14 {dimension_numbers = #tpu.dot_dimension_numbers<[1], [0], [0], [1], [0, 0, 1, 1], [], []>} : vector<8x8xbf16>, vector<8x8xbf16>, vector<8x8xf32> -> vector<8x8xf32>
    %c0_15 = arith.constant 0 : index
    %c0_16 = arith.constant 0 : index
    %27 = vector.load %arg6[%c0_15, %c0_16] : memref<8x32xf32, #tpu.memory_space<vmem>>, vector<8x8xf32>
    tpu.vector_store %arg6[%c0_15, %c0_16], %26 {strides = array<i32>} : memref<8x32xf32, #tpu.memory_space<vmem>>, vector<8x8xf32>,
    %c0_17 = arith.constant 0 : index
    %c0_18 = arith.constant 0 : index
    %c8 = arith.constant 8 : index
    %28 = vector.load %arg2[%c0_17, %c0_18, %c8] : memref<1x8x96xbf16, #tpu.memory_space<vmem>>, vector<1x8x8xbf16>
    %29 = vector.shape_cast %28 : vector<1x8x8xbf16> to vector<8x8xbf16>
    %c0_19 = arith.constant 0 : index
    %c0_20 = arith.constant 0 : index
    %c40 = arith.constant 40 : index
    %30 = vector.load %arg3[%c0_19, %c0_20, %c40] : memref<1x8x96xbf16, #tpu.memory_space<vmem>>, vector<1x8x8xbf16>
    %31 = vector.shape_cast %30 : vector<1x8x8xbf16> to vector<8x8xbf16>
    %c0_21 = arith.constant 0 : index
    %c0_22 = arith.constant 0 : index
    %c72 = arith.constant 72 : index
    %32 = vector.load %arg3[%c0_21, %c0_22, %c72] : memref<1x8x96xbf16, #tpu.memory_space<vmem>>, vector<1x8x8xbf16>
    %33 = vector.shape_cast %32 : vector<1x8x8xbf16> to vector<8x8xbf16>
    %cst_23 = arith.constant dense<0.000000e+00> : vector<8x8xf32>
    %34 = tpu.matmul %29, %31, %cst_23 {dimension_numbers = #tpu.dot_dimension_numbers<[1], [1], [0], [0], [0, 0, 1, 0], [], []>} : vector<8x8xbf16>, vector<8x8xbf16>, vector<8x8xf32> -> vector<8x8xf32>
    %35 = arith.addf %34, %6 : vector<8x8xf32>
    %cst_24 = arith.constant dense<0xFF800000> : vector<8xf32>
    %36 = vector.multi_reduction <maximumf>, %35, %cst_24 [1] : vector<8x8xf32> to vector<8xf32>
    %37 = vector.shape_cast %36 : vector<8xf32> to vector<8x1xf32>
    %38 = vector.broadcast %37 : vector<8x1xf32> to vector<8x8xf32>
    %39 = arith.subf %35, %38 : vector<8x8xf32>
    %40 = math.exp %39 : vector<8x8xf32>
    %cst_25 = arith.constant dense<0.000000e+00> : vector<8xf32>
    %41 = vector.multi_reduction <add>, %40, %cst_25 [1] : vector<8x8xf32> to vector<8xf32>
    %42 = vector.shape_cast %41 : vector<8xf32> to vector<8x1xf32>
    %43 = tpu.reciprocal %42 {approx = true} : vector<8x1xf32> -> vector<8x1xf32>
    %44 = vector.broadcast %43 : vector<8x1xf32> to vector<8x8xf32>
    %45 = arith.mulf %40, %44 : vector<8x8xf32>
    %46 = arith.truncf %45 : vector<8x8xf32> to vector<8x8xbf16>
    %cst_26 = arith.constant dense<0.000000e+00> : vector<8x8xf32>
    %47 = tpu.matmul %46, %33, %cst_26 {dimension_numbers = #tpu.dot_dimension_numbers<[1], [0], [0], [1], [0, 0, 1, 1], [], []>} : vector<8x8xbf16>, vector<8x8xbf16>, vector<8x8xf32> -> vector<8x8xf32>
    %c0_27 = arith.constant 0 : index
    %c8_28 = arith.constant 8 : index
    %48 = vector.load %arg6[%c0_27, %c8_28] : memref<8x32xf32, #tpu.memory_space<vmem>>, vector<8x8xf32>
    tpu.vector_store %arg6[%c0_27, %c8_28], %47 {strides = array<i32>} : memref<8x32xf32, #tpu.memory_space<vmem>>, vector<8x8xf32>,
    %c0_29 = arith.constant 0 : index
    %c0_30 = arith.constant 0 : index
    %c16 = arith.constant 16 : index
    %49 = vector.load %arg2[%c0_29, %c0_30, %c16] : memref<1x8x96xbf16, #tpu.memory_space<vmem>>, vector<1x8x8xbf16>
    %50 = vector.shape_cast %49 : vector<1x8x8xbf16> to vector<8x8xbf16>
    %c0_31 = arith.constant 0 : index
    %c0_32 = arith.constant 0 : index
    %c48 = arith.constant 48 : index
    %51 = vector.load %arg3[%c0_31, %c0_32, %c48] : memref<1x8x96xbf16, #tpu.memory_space<vmem>>, vector<1x8x8xbf16>
    %52 = vector.shape_cast %51 : vector<1x8x8xbf16> to vector<8x8xbf16>
    %c0_33 = arith.constant 0 : index
    %c0_34 = arith.constant 0 : index
    %c80 = arith.constant 80 : index
    %53 = vector.load %arg3[%c0_33, %c0_34, %c80] : memref<1x8x96xbf16, #tpu.memory_space<vmem>>, vector<1x8x8xbf16>
    %54 = vector.shape_cast %53 : vector<1x8x8xbf16> to vector<8x8xbf16>
    %cst_35 = arith.constant dense<0.000000e+00> : vector<8x8xf32>
    %55 = tpu.matmul %50, %52, %cst_35 {dimension_numbers = #tpu.dot_dimension_numbers<[1], [1], [0], [0], [0, 0, 1, 0], [], []>} : vector<8x8xbf16>, vector<8x8xbf16>, vector<8x8xf32> -> vector<8x8xf32>
    %56 = arith.addf %55, %6 : vector<8x8xf32>
    %cst_36 = arith.constant dense<0xFF800000> : vector<8xf32>
    %57 = vector.multi_reduction <maximumf>, %56, %cst_36 [1] : vector<8x8xf32> to vector<8xf32>
    %58 = vector.shape_cast %57 : vector<8xf32> to vector<8x1xf32>
    %59 = vector.broadcast %58 : vector<8x1xf32> to vector<8x8xf32>
    %60 = arith.subf %56, %59 : vector<8x8xf32>
    %61 = math.exp %60 : vector<8x8xf32>
    %cst_37 = arith.constant dense<0.000000e+00> : vector<8xf32>
    %62 = vector.multi_reduction <add>, %61, %cst_37 [1] : vector<8x8xf32> to vector<8xf32>
    %63 = vector.shape_cast %62 : vector<8xf32> to vector<8x1xf32>
    %64 = tpu.reciprocal %63 {approx = true} : vector<8x1xf32> -> vector<8x1xf32>
    %65 = vector.broadcast %64 : vector<8x1xf32> to vector<8x8xf32>
    %66 = arith.mulf %61, %65 : vector<8x8xf32>
    %67 = arith.truncf %66 : vector<8x8xf32> to vector<8x8xbf16>
    %cst_38 = arith.constant dense<0.000000e+00> : vector<8x8xf32>
    %68 = tpu.matmul %67, %54, %cst_38 {dimension_numbers = #tpu.dot_dimension_numbers<[1], [0], [0], [1], [0, 0, 1, 1], [], []>} : vector<8x8xbf16>, vector<8x8xbf16>, vector<8x8xf32> -> vector<8x8xf32>
    %c0_39 = arith.constant 0 : index
    %c16_40 = arith.constant 16 : index
    %69 = vector.load %arg6[%c0_39, %c16_40] : memref<8x32xf32, #tpu.memory_space<vmem>>, vector<8x8xf32>
    tpu.vector_store %arg6[%c0_39, %c16_40], %68 {strides = array<i32>} : memref<8x32xf32, #tpu.memory_space<vmem>>, vector<8x8xf32>,
    %c0_41 = arith.constant 0 : index
    %c0_42 = arith.constant 0 : index
    %c24 = arith.constant 24 : index
    %70 = vector.load %arg2[%c0_41, %c0_42, %c24] : memref<1x8x96xbf16, #tpu.memory_space<vmem>>, vector<1x8x8xbf16>
    %71 = vector.shape_cast %70 : vector<1x8x8xbf16> to vector<8x8xbf16>
    %c0_43 = arith.constant 0 : index
    %c0_44 = arith.constant 0 : index
    %c56 = arith.constant 56 : index
    %72 = vector.load %arg3[%c0_43, %c0_44, %c56] : memref<1x8x96xbf16, #tpu.memory_space<vmem>>, vector<1x8x8xbf16>
    %73 = vector.shape_cast %72 : vector<1x8x8xbf16> to vector<8x8xbf16>
    %c0_45 = arith.constant 0 : index
    %c0_46 = arith.constant 0 : index
    %c88 = arith.constant 88 : index
    %74 = vector.load %arg3[%c0_45, %c0_46, %c88] : memref<1x8x96xbf16, #tpu.memory_space<vmem>>, vector<1x8x8xbf16>
    %75 = vector.shape_cast %74 : vector<1x8x8xbf16> to vector<8x8xbf16>
    %cst_47 = arith.constant dense<0.000000e+00> : vector<8x8xf32>
    %76 = tpu.matmul %71, %73, %cst_47 {dimension_numbers = #tpu.dot_dimension_numbers<[1], [1], [0], [0], [0, 0, 1, 0], [], []>} : vector<8x8xbf16>, vector<8x8xbf16>, vector<8x8xf32> -> vector<8x8xf32>
    %77 = arith.addf %76, %6 : vector<8x8xf32>
    %cst_48 = arith.constant dense<0xFF800000> : vector<8xf32>
    %78 = vector.multi_reduction <maximumf>, %77, %cst_48 [1] : vector<8x8xf32> to vector<8xf32>
    %79 = vector.shape_cast %78 : vector<8xf32> to vector<8x1xf32>
    %80 = vector.broadcast %79 : vector<8x1xf32> to vector<8x8xf32>
    %81 = arith.subf %77, %80 : vector<8x8xf32>
    %82 = math.exp %81 : vector<8x8xf32>
    %cst_49 = arith.constant dense<0.000000e+00> : vector<8xf32>
    %83 = vector.multi_reduction <add>, %82, %cst_49 [1] : vector<8x8xf32> to vector<8xf32>
    %84 = vector.shape_cast %83 : vector<8xf32> to vector<8x1xf32>
    %85 = tpu.reciprocal %84 {approx = true} : vector<8x1xf32> -> vector<8x1xf32>
    %86 = vector.broadcast %85 : vector<8x1xf32> to vector<8x8xf32>
    %87 = arith.mulf %82, %86 : vector<8x8xf32>
    %88 = arith.truncf %87 : vector<8x8xf32> to vector<8x8xbf16>
    %cst_50 = arith.constant dense<0.000000e+00> : vector<8x8xf32>
    %89 = tpu.matmul %88, %75, %cst_50 {dimension_numbers = #tpu.dot_dimension_numbers<[1], [0], [0], [1], [0, 0, 1, 1], [], []>} : vector<8x8xbf16>, vector<8x8xbf16>, vector<8x8xf32> -> vector<8x8xf32>
    %c0_51 = arith.constant 0 : index
    %c24_52 = arith.constant 24 : index
    %90 = vector.load %arg6[%c0_51, %c24_52] : memref<8x32xf32, #tpu.memory_space<vmem>>, vector<8x8xf32>
    tpu.vector_store %arg6[%c0_51, %c24_52], %89 {strides = array<i32>} : memref<8x32xf32, #tpu.memory_space<vmem>>, vector<8x8xf32>,
    %c0_53 = arith.constant 0 : index
    %c0_54 = arith.constant 0 : index
    %91 = vector.load %arg6[%c0_53, %c0_54] : memref<8x32xf32, #tpu.memory_space<vmem>>, vector<8x32xf32>
    %92 = arith.truncf %91 : vector<8x32xf32> to vector<8x32xbf16>
    %c0_55 = arith.constant 0 : index
    %c0_56 = arith.constant 0 : index
    %c0_57 = arith.constant 0 : index
    %93 = vector.load %arg5[%c0_55, %c0_56, %c0_57] : memref<1x8x32xbf16, #tpu.memory_space<vmem>>, vector<1x8x32xbf16>
    %94 = vector.shape_cast %93 : vector<1x8x32xbf16> to vector<8x32xbf16>
    %95 = vector.shape_cast %92 : vector<8x32xbf16> to vector<1x8x32xbf16>
    tpu.vector_store %arg5[%c0_55, %c0_56, %c0_57], %95 {strides = array<i32>} : memref<1x8x32xbf16, #tpu.memory_space<vmem>>, vector<1x8x32xbf16>,
    return
  }
  func.func @transform_0(%arg0: i32, %arg1: i32) -> (i32, i32, i32) {
    %c0_i32 = arith.constant 0 : i32
    %c0_i32_0 = arith.constant 0 : i32
    return %arg0, %arg1, %c0_i32 : i32, i32, i32
  }
  func.func @transform_1(%arg0: i32, %arg1: i32) -> (i32, i32, i32) {
    %c0_i32 = arith.constant 0 : i32
    %c0_i32_0 = arith.constant 0 : i32
    %c0_i32_1 = arith.constant 0 : i32
    return %arg0, %c0_i32, %c0_i32_0 : i32, i32, i32
  }
  func.func @transform_2(%arg0: i32, %arg1: i32) -> (i32, i32, i32) {
    %c0_i32 = arith.constant 0 : i32
    %c0_i32_0 = arith.constant 0 : i32
    return %arg0, %arg1, %c0_i32 : i32, i32, i32
  }
  func.func @transform_3(%arg0: i32, %arg1: i32) -> (i32, i32, i32) {
    %c0_i32 = arith.constant 0 : i32
    %c0_i32_0 = arith.constant 0 : i32
    return %arg0, %arg1, %c0_i32 : i32, i32, i32
  }
}

module attributes {stable_mosaic.version = 11 : i64} {
  func.func @_ln_matmul_kernel(%arg0: i32, %arg1: i32, %arg2: memref<16x32xf32, #tpu.memory_space<vmem>>, %arg3: memref<1x32xf32, #tpu.memory_space<vmem>>, %arg4: memref<1x32xf32, #tpu.memory_space<vmem>>, %arg5: memref<32x32xbf16, #tpu.memory_space<vmem>>, %arg6: memref<1x32xf32, #tpu.memory_space<vmem>>, %arg7: memref<16x32xbf16, #tpu.memory_space<vmem>>, %arg8: memref<16x32xbf16, #tpu.memory_space<vmem>>) attributes {dimension_semantics = [#tpu.dimension_semantics<parallel>, #tpu.dimension_semantics<arbitrary>], iteration_bounds = array<i64: 1, 1>, scalar_prefetch = 0 : i64, scratch_operands = 1 : i64, tpu.core_type = #tpu.core_type<tc>, window_params = [{transform_indices = @transform_0, window_bounds = array<i64: 16, 32>}, {pipeline_mode = #tpu.pipeline_mode<synchronous>, transform_indices = @transform_1, window_bounds = array<i64: 1, 32>}, {pipeline_mode = #tpu.pipeline_mode<synchronous>, transform_indices = @transform_2, window_bounds = array<i64: 1, 32>}, {transform_indices = @transform_3, window_bounds = array<i64: 32, 32>}, {transform_indices = @transform_4, window_bounds = array<i64: 1, 32>}, {transform_indices = @transform_5, window_bounds = array<i64: 16, 32>}]} {
    %c0_i32 = arith.constant 0 : i32
    %0 = arith.cmpi eq, %arg1, %c0_i32 : i32
    %1 = arith.extui %0 : i1 to i32
    %c0_i32_0 = arith.constant 0 : i32
    %2 = arith.cmpi ne, %1, %c0_i32_0 : i32
    scf.if %2 {
      %c0_8 = arith.constant 0 : index
      %c0_9 = arith.constant 0 : index
      %11 = vector.load %arg2[%c0_8, %c0_9] : memref<16x32xf32, #tpu.memory_space<vmem>>, vector<16x32xf32>
      %cst_10 = arith.constant dense<0.000000e+00> : vector<16xf32>
      %12 = vector.multi_reduction <add>, %11, %cst_10 [1] : vector<16x32xf32> to vector<16xf32>
      %13 = vector.shape_cast %12 : vector<16xf32> to vector<16x1xf32>
      %cst_11 = arith.constant 3.200000e+01 : f32
      %14 = vector.broadcast %cst_11 : f32 to vector<16x1xf32>
      %15 = arith.divf %13, %14 : vector<16x1xf32>
      %16 = vector.broadcast %15 : vector<16x1xf32> to vector<16x32xf32>
      %17 = arith.subf %11, %16 : vector<16x32xf32>
      %18 = arith.mulf %17, %17 : vector<16x32xf32>
      %cst_12 = arith.constant dense<0.000000e+00> : vector<16xf32>
      %19 = vector.multi_reduction <add>, %18, %cst_12 [1] : vector<16x32xf32> to vector<16xf32>
      %20 = vector.shape_cast %19 : vector<16xf32> to vector<16x1xf32>
      %cst_13 = arith.constant 3.100000e+01 : f32
      %21 = vector.broadcast %cst_13 : f32 to vector<16x1xf32>
      %22 = arith.divf %20, %21 : vector<16x1xf32>
      %23 = math.sqrt %22 : vector<16x1xf32>
      %cst_14 = arith.constant 9.99999997E-7 : f32
      %24 = vector.broadcast %cst_14 : f32 to vector<16x1xf32>
      %25 = arith.addf %23, %24 : vector<16x1xf32>
      %cst_15 = arith.constant 1.000000e+00 : f32
      %26 = vector.broadcast %cst_15 : f32 to vector<16x1xf32>
      %27 = arith.divf %26, %25 : vector<16x1xf32>
      %c0_16 = arith.constant 0 : index
      %c0_17 = arith.constant 0 : index
      %28 = vector.load %arg3[%c0_16, %c0_17] : memref<1x32xf32, #tpu.memory_space<vmem>>, vector<1x32xf32>
      %29 = vector.broadcast %27 : vector<16x1xf32> to vector<16x32xf32>
      %30 = arith.mulf %17, %29 : vector<16x32xf32>
      %31 = vector.broadcast %28 : vector<1x32xf32> to vector<16x32xf32>
      %32 = arith.mulf %31, %30 : vector<16x32xf32>
      %c0_18 = arith.constant 0 : index
      %c0_19 = arith.constant 0 : index
      %33 = vector.load %arg4[%c0_18, %c0_19] : memref<1x32xf32, #tpu.memory_space<vmem>>, vector<1x32xf32>
      %34 = vector.broadcast %33 : vector<1x32xf32> to vector<16x32xf32>
      %35 = arith.addf %32, %34 : vector<16x32xf32>
      %36 = arith.truncf %35 : vector<16x32xf32> to vector<16x32xbf16>
      %c0_20 = arith.constant 0 : index
      %c0_21 = arith.constant 0 : index
      %37 = vector.load %arg8[%c0_20, %c0_21] : memref<16x32xbf16, #tpu.memory_space<vmem>>, vector<16x32xbf16>
      tpu.vector_store %arg8[%c0_20, %c0_21], %36 {strides = array<i32>} : memref<16x32xbf16, #tpu.memory_space<vmem>>, vector<16x32xbf16>,
    } else {
    }
    %c0 = arith.constant 0 : index
    %c0_1 = arith.constant 0 : index
    %3 = vector.load %arg8[%c0, %c0_1] : memref<16x32xbf16, #tpu.memory_space<vmem>>, vector<16x32xbf16>
    %c0_2 = arith.constant 0 : index
    %c0_3 = arith.constant 0 : index
    %4 = vector.load %arg5[%c0_2, %c0_3] : memref<32x32xbf16, #tpu.memory_space<vmem>>, vector<32x32xbf16>
    %cst = arith.constant dense<0.000000e+00> : vector<16x32xf32>
    %5 = tpu.matmul %3, %4, %cst {dimension_numbers = #tpu.dot_dimension_numbers<[1], [0], [0], [1], [0, 0, 1, 1], [], []>} : vector<16x32xbf16>, vector<32x32xbf16>, vector<16x32xf32> -> vector<16x32xf32>
    %c0_4 = arith.constant 0 : index
    %c0_5 = arith.constant 0 : index
    %6 = vector.load %arg6[%c0_4, %c0_5] : memref<1x32xf32, #tpu.memory_space<vmem>>, vector<1x32xf32>
    %7 = vector.broadcast %6 : vector<1x32xf32> to vector<16x32xf32>
    %8 = arith.addf %5, %7 : vector<16x32xf32>
    %9 = arith.truncf %8 : vector<16x32xf32> to vector<16x32xbf16>
    %c0_6 = arith.constant 0 : index
    %c0_7 = arith.constant 0 : index
    %10 = vector.load %arg7[%c0_6, %c0_7] : memref<16x32xbf16, #tpu.memory_space<vmem>>, vector<16x32xbf16>
    tpu.vector_store %arg7[%c0_6, %c0_7], %9 {strides = array<i32>} : memref<16x32xbf16, #tpu.memory_space<vmem>>, vector<16x32xbf16>,
    return
  }
  func.func @transform_0(%arg0: i32, %arg1: i32) -> (i32, i32) {
    %c0_i32 = arith.constant 0 : i32
    %c0_i32_0 = arith.constant 0 : i32
    return %arg0, %c0_i32 : i32, i32
  }
  func.func @transform_1(%arg0: i32, %arg1: i32) -> (i32, i32) {
    %c0_i32 = arith.constant 0 : i32
    %c0_i32_0 = arith.constant 0 : i32
    %c0_i32_1 = arith.constant 0 : i32
    return %c0_i32, %c0_i32_0 : i32, i32
  }
  func.func @transform_2(%arg0: i32, %arg1: i32) -> (i32, i32) {
    %c0_i32 = arith.constant 0 : i32
    %c0_i32_0 = arith.constant 0 : i32
    %c0_i32_1 = arith.constant 0 : i32
    return %c0_i32, %c0_i32_0 : i32, i32
  }
  func.func @transform_3(%arg0: i32, %arg1: i32) -> (i32, i32) {
    %c0_i32 = arith.constant 0 : i32
    %c0_i32_0 = arith.constant 0 : i32
    return %c0_i32, %arg1 : i32, i32
  }
  func.func @transform_4(%arg0: i32, %arg1: i32) -> (i32, i32) {
    %c0_i32 = arith.constant 0 : i32
    %c0_i32_0 = arith.constant 0 : i32
    return %c0_i32, %arg1 : i32, i32
  }
  func.func @transform_5(%arg0: i32, %arg1: i32) -> (i32, i32) {
    %c0_i32 = arith.constant 0 : i32
    return %arg0, %arg1 : i32, i32
  }
}

module attributes {stable_mosaic.version = 11 : i64} {
  func.func @_matmul_bias_kernel(%arg0: i32, %arg1: i32, %arg2: i32, %arg3: memref<16x32xbf16, #tpu.memory_space<vmem>>, %arg4: memref<32x64xbf16, #tpu.memory_space<vmem>>, %arg5: memref<1x64xf32, #tpu.memory_space<vmem>>, %arg6: memref<16x64xbf16, #tpu.memory_space<vmem>>, %arg7: memref<16x64xf32, #tpu.memory_space<vmem>>) attributes {dimension_semantics = [#tpu.dimension_semantics<parallel>, #tpu.dimension_semantics<parallel>, #tpu.dimension_semantics<arbitrary>], iteration_bounds = array<i64: 1, 1, 1>, scalar_prefetch = 0 : i64, scratch_operands = 1 : i64, tpu.core_type = #tpu.core_type<tc>, window_params = [{transform_indices = @transform_0, window_bounds = array<i64: 16, 32>}, {transform_indices = @transform_1, window_bounds = array<i64: 32, 64>}, {transform_indices = @transform_2, window_bounds = array<i64: 1, 64>}, {transform_indices = @transform_3, window_bounds = array<i64: 16, 64>}]} {
    %c0_i32 = arith.constant 0 : i32
    %0 = arith.cmpi eq, %arg2, %c0_i32 : i32
    %1 = arith.extui %0 : i1 to i32
    %c0_i32_0 = arith.constant 0 : i32
    %2 = arith.cmpi ne, %1, %c0_i32_0 : i32
    scf.if %2 {
      %cst_10 = arith.constant 0.000000e+00 : f32
      %12 = vector.broadcast %cst_10 : f32 to vector<16x64xf32>
      %c0_11 = arith.constant 0 : index
      %c0_12 = arith.constant 0 : index
      %13 = vector.load %arg7[%c0_11, %c0_12] : memref<16x64xf32, #tpu.memory_space<vmem>>, vector<16x64xf32>
      tpu.vector_store %arg7[%c0_11, %c0_12], %12 {strides = array<i32>} : memref<16x64xf32, #tpu.memory_space<vmem>>, vector<16x64xf32>,
    } else {
    }
    %c0 = arith.constant 0 : index
    %c0_1 = arith.constant 0 : index
    %3 = vector.load %arg7[%c0, %c0_1] : memref<16x64xf32, #tpu.memory_space<vmem>>, vector<16x64xf32>
    %c0_2 = arith.constant 0 : index
    %c0_3 = arith.constant 0 : index
    %4 = vector.load %arg3[%c0_2, %c0_3] : memref<16x32xbf16, #tpu.memory_space<vmem>>, vector<16x32xbf16>
    %c0_4 = arith.constant 0 : index
    %c0_5 = arith.constant 0 : index
    %5 = vector.load %arg4[%c0_4, %c0_5] : memref<32x64xbf16, #tpu.memory_space<vmem>>, vector<32x64xbf16>
    %cst = arith.constant dense<0.000000e+00> : vector<16x64xf32>
    %6 = tpu.matmul %4, %5, %cst {dimension_numbers = #tpu.dot_dimension_numbers<[1], [0], [0], [1], [0, 0, 1, 1], [], []>} : vector<16x32xbf16>, vector<32x64xbf16>, vector<16x64xf32> -> vector<16x64xf32>
    %7 = arith.addf %3, %6 : vector<16x64xf32>
    %c0_6 = arith.constant 0 : index
    %c0_7 = arith.constant 0 : index
    %8 = vector.load %arg7[%c0_6, %c0_7] : memref<16x64xf32, #tpu.memory_space<vmem>>, vector<16x64xf32>
    tpu.vector_store %arg7[%c0_6, %c0_7], %7 {strides = array<i32>} : memref<16x64xf32, #tpu.memory_space<vmem>>, vector<16x64xf32>,
    %c0_i32_8 = arith.constant 0 : i32
    %9 = arith.cmpi eq, %arg2, %c0_i32_8 : i32
    %10 = arith.extui %9 : i1 to i32
    %c0_i32_9 = arith.constant 0 : i32
    %11 = arith.cmpi ne, %10, %c0_i32_9 : i32
    scf.if %11 {
      %c0_10 = arith.constant 0 : index
      %c0_11 = arith.constant 0 : index
      %12 = vector.load %arg7[%c0_10, %c0_11] : memref<16x64xf32, #tpu.memory_space<vmem>>, vector<16x64xf32>
      %c0_12 = arith.constant 0 : index
      %c0_13 = arith.constant 0 : index
      %13 = vector.load %arg5[%c0_12, %c0_13] : memref<1x64xf32, #tpu.memory_space<vmem>>, vector<1x64xf32>
      %14 = vector.broadcast %13 : vector<1x64xf32> to vector<16x64xf32>
      %15 = arith.addf %12, %14 : vector<16x64xf32>
      %16 = arith.truncf %15 : vector<16x64xf32> to vector<16x64xbf16>
      %c0_14 = arith.constant 0 : index
      %c0_15 = arith.constant 0 : index
      %17 = vector.load %arg6[%c0_14, %c0_15] : memref<16x64xbf16, #tpu.memory_space<vmem>>, vector<16x64xbf16>
      tpu.vector_store %arg6[%c0_14, %c0_15], %16 {strides = array<i32>} : memref<16x64xbf16, #tpu.memory_space<vmem>>, vector<16x64xbf16>,
    } else {
    }
    return
  }
  func.func @transform_0(%arg0: i32, %arg1: i32, %arg2: i32) -> (i32, i32) {
    %c0_i32 = arith.constant 0 : i32
    return %arg0, %arg2 : i32, i32
  }
  func.func @transform_1(%arg0: i32, %arg1: i32, %arg2: i32) -> (i32, i32) {
    %c0_i32 = arith.constant 0 : i32
    return %arg2, %arg1 : i32, i32
  }
  func.func @transform_2(%arg0: i32, %arg1: i32, %arg2: i32) -> (i32, i32) {
    %c0_i32 = arith.constant 0 : i32
    %c0_i32_0 = arith.constant 0 : i32
    return %c0_i32, %arg1 : i32, i32
  }
  func.func @transform_3(%arg0: i32, %arg1: i32, %arg2: i32) -> (i32, i32) {
    %c0_i32 = arith.constant 0 : i32
    return %arg0, %arg1 : i32, i32
  }
}

module attributes {stable_mosaic.version = 11 : i64} {
  func.func @_attention_kernel(%arg0: i32, %arg1: i32, %arg2: memref<1x8x32xbf16, #tpu.memory_space<vmem>>, %arg3: memref<1x8x64xbf16, #tpu.memory_space<vmem>>, %arg4: memref<1x1x8xf32, #tpu.memory_space<vmem>>, %arg5: memref<1x8x32xbf16, #tpu.memory_space<vmem>>, %arg6: memref<8x32xf32, #tpu.memory_space<vmem>>) attributes {dimension_semantics = [#tpu.dimension_semantics<parallel>, #tpu.dimension_semantics<parallel>], iteration_bounds = array<i64: 2, 1>, scalar_prefetch = 0 : i64, scratch_operands = 1 : i64, tpu.core_type = #tpu.core_type<tc>, window_params = [{transform_indices = @transform_0, window_bounds = array<i64: 1, 8, 32>}, {transform_indices = @transform_1, window_bounds = array<i64: 1, 8, 64>}, {transform_indices = @transform_2, window_bounds = array<i64: 1, 1, 8>}, {transform_indices = @transform_3, window_bounds = array<i64: 1, 8, 32>}]} {
    %c0 = arith.constant 0 : index
    %c0_0 = arith.constant 0 : index
    %c0_1 = arith.constant 0 : index
    %0 = vector.load %arg4[%c0, %c0_0, %c0_1] : memref<1x1x8xf32, #tpu.memory_space<vmem>>, vector<1x1x8xf32>
    %1 = vector.shape_cast %0 : vector<1x1x8xf32> to vector<1x8xf32>
    %cst = arith.constant 0.000000e+00 : f32
    %2 = vector.broadcast %cst : f32 to vector<1x8xf32>
    %3 = arith.cmpf ogt, %1, %2 : vector<1x8xf32>
    %cst_2 = arith.constant 0.000000e+00 : f32
    %cst_3 = arith.constant -1.000000e+09 : f32
    %4 = vector.broadcast %cst_2 : f32 to vector<1x8xf32>
    %5 = vector.broadcast %cst_3 : f32 to vector<1x8xf32>
    %6 = arith.select %3, %4, %5 : vector<1x8xi1>, vector<1x8xf32>
    %c0_4 = arith.constant 0 : index
    %c0_5 = arith.constant 0 : index
    %c0_6 = arith.constant 0 : index
    %7 = vector.load %arg2[%c0_4, %c0_5, %c0_6] : memref<1x8x32xbf16, #tpu.memory_space<vmem>>, vector<1x8x8xbf16>
    %8 = vector.shape_cast %7 : vector<1x8x8xbf16> to vector<8x8xbf16>
    %c0_7 = arith.constant 0 : index
    %c0_8 = arith.constant 0 : index
    %c0_9 = arith.constant 0 : index
    %9 = vector.load %arg3[%c0_7, %c0_8, %c0_9] : memref<1x8x64xbf16, #tpu.memory_space<vmem>>, vector<1x8x8xbf16>
    %10 = vector.shape_cast %9 : vector<1x8x8xbf16> to vector<8x8xbf16>
    %c0_10 = arith.constant 0 : index
    %c0_11 = arith.constant 0 : index
    %c32 = arith.constant 32 : index
    %11 = vector.load %arg3[%c0_10, %c0_11, %c32] : memref<1x8x64xbf16, #tpu.memory_space<vmem>>, vector<1x8x8xbf16>
    %12 = vector.shape_cast %11 : vector<1x8x8xbf16> to vector<8x8xbf16>
    %cst_12 = arith.constant dense<0.000000e+00> : vector<8x8xf32>
    %13 = tpu.matmul %8, %10, %cst_12 {dimension_numbers = #tpu.dot_dimension_numbers<[1], [1], [0], [0], [0, 0, 1, 0], [], []>} : vector<8x8xbf16>, vector<8x8xbf16>, vector<8x8xf32> -> vector<8x8xf32>
    %14 = vector.broadcast %6 : vector<1x8xf32> to vector<8x8xf32>
    %15 = arith.addf %13, %14 : vector<8x8xf32>
    %cst_13 = arith.constant dense<0xFF800000> : vector<8xf32>
    %16 = vector.multi_reduction <maximumf>, %15, %cst_13 [1] : vector<8x8xf32> to vector<8xf32>
    %17 = vector.shape_cast %16 : vector<8xf32> to vector<8x1xf32>
    %18 = vector.broadcast %17 : vector<8x1xf32> to vector<8x8xf32>
    %19 = arith.subf %15, %18 : vector<8x8xf32>
    %20 = math.exp %19 : vector<8x8xf32>
    %cst_14 = arith.constant dense<0.000000e+00> : vector<8xf32>
    %21 = vector.multi_reduction <add>, %20, %cst_14 [1] : vector<8x8xf32> to vector<8xf32>
    %22 = vector.shape_cast %21 : vector<8xf32> to vector<8x1xf32>
    %23 = tpu.reciprocal %22 {approx = true} : vector<8x1xf32> -> vector<8x1xf32>
    %24 = vector.broadcast %23 : vector<8x1xf32> to vector<8x8xf32>
    %25 = arith.mulf %20, %24 : vector<8x8xf32>
    %26 = arith.truncf %25 : vector<8x8xf32> to vector<8x8xbf16>
    %cst_15 = arith.constant dense<0.000000e+00> : vector<8x8xf32>
    %27 = tpu.matmul %26, %12, %cst_15 {dimension_numbers = #tpu.dot_dimension_numbers<[1], [0], [0], [1], [0, 0, 1, 1], [], []>} : vector<8x8xbf16>, vector<8x8xbf16>, vector<8x8xf32> -> vector<8x8xf32>
    %c0_16 = arith.constant 0 : index
    %c0_17 = arith.constant 0 : index
    %28 = vector.load %arg6[%c0_16, %c0_17] : memref<8x32xf32, #tpu.memory_space<vmem>>, vector<8x8xf32>
    tpu.vector_store %arg6[%c0_16, %c0_17], %27 {strides = array<i32>} : memref<8x32xf32, #tpu.memory_space<vmem>>, vector<8x8xf32>,
    %c0_18 = arith.constant 0 : index
    %c0_19 = arith.constant 0 : index
    %c8 = arith.constant 8 : index
    %29 = vector.load %arg2[%c0_18, %c0_19, %c8] : memref<1x8x32xbf16, #tpu.memory_space<vmem>>, vector<1x8x8xbf16>
    %30 = vector.shape_cast %29 : vector<1x8x8xbf16> to vector<8x8xbf16>
    %c0_20 = arith.constant 0 : index
    %c0_21 = arith.constant 0 : index
    %c8_22 = arith.constant 8 : index
    %31 = vector.load %arg3[%c0_20, %c0_21, %c8_22] : memref<1x8x64xbf16, #tpu.memory_space<vmem>>, vector<1x8x8xbf16>
    %32 = vector.shape_cast %31 : vector<1x8x8xbf16> to vector<8x8xbf16>
    %c0_23 = arith.constant 0 : index
    %c0_24 = arith.constant 0 : index
    %c40 = arith.constant 40 : index
    %33 = vector.load %arg3[%c0_23, %c0_24, %c40] : memref<1x8x64xbf16, #tpu.memory_space<vmem>>, vector<1x8x8xbf16>
    %34 = vector.shape_cast %33 : vector<1x8x8xbf16> to vector<8x8xbf16>
    %cst_25 = arith.constant dense<0.000000e+00> : vector<8x8xf32>
    %35 = tpu.matmul %30, %32, %cst_25 {dimension_numbers = #tpu.dot_dimension_numbers<[1], [1], [0], [0], [0, 0, 1, 0], [], []>} : vector<8x8xbf16>, vector<8x8xbf16>, vector<8x8xf32> -> vector<8x8xf32>
    %36 = vector.broadcast %6 : vector<1x8xf32> to vector<8x8xf32>
    %37 = arith.addf %35, %36 : vector<8x8xf32>
    %cst_26 = arith.constant dense<0xFF800000> : vector<8xf32>
    %38 = vector.multi_reduction <maximumf>, %37, %cst_26 [1] : vector<8x8xf32> to vector<8xf32>
    %39 = vector.shape_cast %38 : vector<8xf32> to vector<8x1xf32>
    %40 = vector.broadcast %39 : vector<8x1xf32> to vector<8x8xf32>
    %41 = arith.subf %37, %40 : vector<8x8xf32>
    %42 = math.exp %41 : vector<8x8xf32>
    %cst_27 = arith.constant dense<0.000000e+00> : vector<8xf32>
    %43 = vector.multi_reduction <add>, %42, %cst_27 [1] : vector<8x8xf32> to vector<8xf32>
    %44 = vector.shape_cast %43 : vector<8xf32> to vector<8x1xf32>
    %45 = tpu.reciprocal %44 {approx = true} : vector<8x1xf32> -> vector<8x1xf32>
    %46 = vector.broadcast %45 : vector<8x1xf32> to vector<8x8xf32>
    %47 = arith.mulf %42, %46 : vector<8x8xf32>
    %48 = arith.truncf %47 : vector<8x8xf32> to vector<8x8xbf16>
    %cst_28 = arith.constant dense<0.000000e+00> : vector<8x8xf32>
    %49 = tpu.matmul %48, %34, %cst_28 {dimension_numbers = #tpu.dot_dimension_numbers<[1], [0], [0], [1], [0, 0, 1, 1], [], []>} : vector<8x8xbf16>, vector<8x8xbf16>, vector<8x8xf32> -> vector<8x8xf32>
    %c0_29 = arith.constant 0 : index
    %c8_30 = arith.constant 8 : index
    %50 = vector.load %arg6[%c0_29, %c8_30] : memref<8x32xf32, #tpu.memory_space<vmem>>, vector<8x8xf32>
    tpu.vector_store %arg6[%c0_29, %c8_30], %49 {strides = array<i32>} : memref<8x32xf32, #tpu.memory_space<vmem>>, vector<8x8xf32>,
    %c0_31 = arith.constant 0 : index
    %c0_32 = arith.constant 0 : index
    %c16 = arith.constant 16 : index
    %51 = vector.load %arg2[%c0_31, %c0_32, %c16] : memref<1x8x32xbf16, #tpu.memory_space<vmem>>, vector<1x8x8xbf16>
    %52 = vector.shape_cast %51 : vector<1x8x8xbf16> to vector<8x8xbf16>
    %c0_33 = arith.constant 0 : index
    %c0_34 = arith.constant 0 : index
    %c16_35 = arith.constant 16 : index
    %53 = vector.load %arg3[%c0_33, %c0_34, %c16_35] : memref<1x8x64xbf16, #tpu.memory_space<vmem>>, vector<1x8x8xbf16>
    %54 = vector.shape_cast %53 : vector<1x8x8xbf16> to vector<8x8xbf16>
    %c0_36 = arith.constant 0 : index
    %c0_37 = arith.constant 0 : index
    %c48 = arith.constant 48 : index
    %55 = vector.load %arg3[%c0_36, %c0_37, %c48] : memref<1x8x64xbf16, #tpu.memory_space<vmem>>, vector<1x8x8xbf16>
    %56 = vector.shape_cast %55 : vector<1x8x8xbf16> to vector<8x8xbf16>
    %cst_38 = arith.constant dense<0.000000e+00> : vector<8x8xf32>
    %57 = tpu.matmul %52, %54, %cst_38 {dimension_numbers = #tpu.dot_dimension_numbers<[1], [1], [0], [0], [0, 0, 1, 0], [], []>} : vector<8x8xbf16>, vector<8x8xbf16>, vector<8x8xf32> -> vector<8x8xf32>
    %58 = vector.broadcast %6 : vector<1x8xf32> to vector<8x8xf32>
    %59 = arith.addf %57, %58 : vector<8x8xf32>
    %cst_39 = arith.constant dense<0xFF800000> : vector<8xf32>
    %60 = vector.multi_reduction <maximumf>, %59, %cst_39 [1] : vector<8x8xf32> to vector<8xf32>
    %61 = vector.shape_cast %60 : vector<8xf32> to vector<8x1xf32>
    %62 = vector.broadcast %61 : vector<8x1xf32> to vector<8x8xf32>
    %63 = arith.subf %59, %62 : vector<8x8xf32>
    %64 = math.exp %63 : vector<8x8xf32>
    %cst_40 = arith.constant dense<0.000000e+00> : vector<8xf32>
    %65 = vector.multi_reduction <add>, %64, %cst_40 [1] : vector<8x8xf32> to vector<8xf32>
    %66 = vector.shape_cast %65 : vector<8xf32> to vector<8x1xf32>
    %67 = tpu.reciprocal %66 {approx = true} : vector<8x1xf32> -> vector<8x1xf32>
    %68 = vector.broadcast %67 : vector<8x1xf32> to vector<8x8xf32>
    %69 = arith.mulf %64, %68 : vector<8x8xf32>
    %70 = arith.truncf %69 : vector<8x8xf32> to vector<8x8xbf16>
    %cst_41 = arith.constant dense<0.000000e+00> : vector<8x8xf32>
    %71 = tpu.matmul %70, %56, %cst_41 {dimension_numbers = #tpu.dot_dimension_numbers<[1], [0], [0], [1], [0, 0, 1, 1], [], []>} : vector<8x8xbf16>, vector<8x8xbf16>, vector<8x8xf32> -> vector<8x8xf32>
    %c0_42 = arith.constant 0 : index
    %c16_43 = arith.constant 16 : index
    %72 = vector.load %arg6[%c0_42, %c16_43] : memref<8x32xf32, #tpu.memory_space<vmem>>, vector<8x8xf32>
    tpu.vector_store %arg6[%c0_42, %c16_43], %71 {strides = array<i32>} : memref<8x32xf32, #tpu.memory_space<vmem>>, vector<8x8xf32>,
    %c0_44 = arith.constant 0 : index
    %c0_45 = arith.constant 0 : index
    %c24 = arith.constant 24 : index
    %73 = vector.load %arg2[%c0_44, %c0_45, %c24] : memref<1x8x32xbf16, #tpu.memory_space<vmem>>, vector<1x8x8xbf16>
    %74 = vector.shape_cast %73 : vector<1x8x8xbf16> to vector<8x8xbf16>
    %c0_46 = arith.constant 0 : index
    %c0_47 = arith.constant 0 : index
    %c24_48 = arith.constant 24 : index
    %75 = vector.load %arg3[%c0_46, %c0_47, %c24_48] : memref<1x8x64xbf16, #tpu.memory_space<vmem>>, vector<1x8x8xbf16>
    %76 = vector.shape_cast %75 : vector<1x8x8xbf16> to vector<8x8xbf16>
    %c0_49 = arith.constant 0 : index
    %c0_50 = arith.constant 0 : index
    %c56 = arith.constant 56 : index
    %77 = vector.load %arg3[%c0_49, %c0_50, %c56] : memref<1x8x64xbf16, #tpu.memory_space<vmem>>, vector<1x8x8xbf16>
    %78 = vector.shape_cast %77 : vector<1x8x8xbf16> to vector<8x8xbf16>
    %cst_51 = arith.constant dense<0.000000e+00> : vector<8x8xf32>
    %79 = tpu.matmul %74, %76, %cst_51 {dimension_numbers = #tpu.dot_dimension_numbers<[1], [1], [0], [0], [0, 0, 1, 0], [], []>} : vector<8x8xbf16>, vector<8x8xbf16>, vector<8x8xf32> -> vector<8x8xf32>
    %80 = vector.broadcast %6 : vector<1x8xf32> to vector<8x8xf32>
    %81 = arith.addf %79, %80 : vector<8x8xf32>
    %cst_52 = arith.constant dense<0xFF800000> : vector<8xf32>
    %82 = vector.multi_reduction <maximumf>, %81, %cst_52 [1] : vector<8x8xf32> to vector<8xf32>
    %83 = vector.shape_cast %82 : vector<8xf32> to vector<8x1xf32>
    %84 = vector.broadcast %83 : vector<8x1xf32> to vector<8x8xf32>
    %85 = arith.subf %81, %84 : vector<8x8xf32>
    %86 = math.exp %85 : vector<8x8xf32>
    %cst_53 = arith.constant dense<0.000000e+00> : vector<8xf32>
    %87 = vector.multi_reduction <add>, %86, %cst_53 [1] : vector<8x8xf32> to vector<8xf32>
    %88 = vector.shape_cast %87 : vector<8xf32> to vector<8x1xf32>
    %89 = tpu.reciprocal %88 {approx = true} : vector<8x1xf32> -> vector<8x1xf32>
    %90 = vector.broadcast %89 : vector<8x1xf32> to vector<8x8xf32>
    %91 = arith.mulf %86, %90 : vector<8x8xf32>
    %92 = arith.truncf %91 : vector<8x8xf32> to vector<8x8xbf16>
    %cst_54 = arith.constant dense<0.000000e+00> : vector<8x8xf32>
    %93 = tpu.matmul %92, %78, %cst_54 {dimension_numbers = #tpu.dot_dimension_numbers<[1], [0], [0], [1], [0, 0, 1, 1], [], []>} : vector<8x8xbf16>, vector<8x8xbf16>, vector<8x8xf32> -> vector<8x8xf32>
    %c0_55 = arith.constant 0 : index
    %c24_56 = arith.constant 24 : index
    %94 = vector.load %arg6[%c0_55, %c24_56] : memref<8x32xf32, #tpu.memory_space<vmem>>, vector<8x8xf32>
    tpu.vector_store %arg6[%c0_55, %c24_56], %93 {strides = array<i32>} : memref<8x32xf32, #tpu.memory_space<vmem>>, vector<8x8xf32>,
    %c0_57 = arith.constant 0 : index
    %c0_58 = arith.constant 0 : index
    %95 = vector.load %arg6[%c0_57, %c0_58] : memref<8x32xf32, #tpu.memory_space<vmem>>, vector<8x32xf32>
    %96 = arith.truncf %95 : vector<8x32xf32> to vector<8x32xbf16>
    %c0_59 = arith.constant 0 : index
    %c0_60 = arith.constant 0 : index
    %c0_61 = arith.constant 0 : index
    %97 = vector.load %arg5[%c0_59, %c0_60, %c0_61] : memref<1x8x32xbf16, #tpu.memory_space<vmem>>, vector<1x8x32xbf16>
    %98 = vector.shape_cast %97 : vector<1x8x32xbf16> to vector<8x32xbf16>
    %99 = vector.shape_cast %96 : vector<8x32xbf16> to vector<1x8x32xbf16>
    tpu.vector_store %arg5[%c0_59, %c0_60, %c0_61], %99 {strides = array<i32>} : memref<1x8x32xbf16, #tpu.memory_space<vmem>>, vector<1x8x32xbf16>,
    return
  }
  func.func @transform_0(%arg0: i32, %arg1: i32) -> (i32, i32, i32) {
    %c0_i32 = arith.constant 0 : i32
    %c0_i32_0 = arith.constant 0 : i32
    return %arg0, %arg1, %c0_i32 : i32, i32, i32
  }
  func.func @transform_1(%arg0: i32, %arg1: i32) -> (i32, i32, i32) {
    %c0_i32 = arith.constant 0 : i32
    %c0_i32_0 = arith.constant 0 : i32
    %c0_i32_1 = arith.constant 0 : i32
    return %arg0, %c0_i32, %c0_i32_0 : i32, i32, i32
  }
  func.func @transform_2(%arg0: i32, %arg1: i32) -> (i32, i32, i32) {
    %c0_i32 = arith.constant 0 : i32
    %c0_i32_0 = arith.constant 0 : i32
    %c0_i32_1 = arith.constant 0 : i32
    return %arg0, %c0_i32, %c0_i32_0 : i32, i32, i32
  }
  func.func @transform_3(%arg0: i32, %arg1: i32) -> (i32, i32, i32) {
    %c0_i32 = arith.constant 0 : i32
    %c0_i32_0 = arith.constant 0 : i32
    return %arg0, %arg1, %c0_i32 : i32, i32, i32
  }
}

module attributes {stable_mosaic.version = 11 : i64} {
  func.func @_ffn_kernel(%arg0: i32, %arg1: i32, %arg2: memref<16x32xf32, #tpu.memory_space<vmem>>, %arg3: memref<1x32xf32, #tpu.memory_space<vmem>>, %arg4: memref<1x32xf32, #tpu.memory_space<vmem>>, %arg5: memref<32x64xbf16, #tpu.memory_space<vmem>>, %arg6: memref<1x64xf32, #tpu.memory_space<vmem>>, %arg7: memref<64x32xbf16, #tpu.memory_space<vmem>>, %arg8: memref<1x32xf32, #tpu.memory_space<vmem>>, %arg9: memref<16x32xf32, #tpu.memory_space<vmem>>, %arg10: memref<16x32xbf16, #tpu.memory_space<vmem>>, %arg11: memref<16x32xf32, #tpu.memory_space<vmem>>) attributes {dimension_semantics = [#tpu.dimension_semantics<parallel>, #tpu.dimension_semantics<arbitrary>], iteration_bounds = array<i64: 1, 1>, scalar_prefetch = 0 : i64, scratch_operands = 2 : i64, tpu.core_type = #tpu.core_type<tc>, window_params = [{transform_indices = @transform_0, window_bounds = array<i64: 16, 32>}, {pipeline_mode = #tpu.pipeline_mode<synchronous>, transform_indices = @transform_1, window_bounds = array<i64: 1, 32>}, {pipeline_mode = #tpu.pipeline_mode<synchronous>, transform_indices = @transform_2, window_bounds = array<i64: 1, 32>}, {transform_indices = @transform_3, window_bounds = array<i64: 32, 64>}, {transform_indices = @transform_4, window_bounds = array<i64: 1, 64>}, {transform_indices = @transform_5, window_bounds = array<i64: 64, 32>}, {pipeline_mode = #tpu.pipeline_mode<synchronous>, transform_indices = @transform_6, window_bounds = array<i64: 1, 32>}, {transform_indices = @transform_7, window_bounds = array<i64: 16, 32>}]} {
    %c0_i32 = arith.constant 0 : i32
    %0 = arith.cmpi eq, %arg1, %c0_i32 : i32
    %1 = arith.extui %0 : i1 to i32
    %c0_i32_0 = arith.constant 0 : i32
    %2 = arith.cmpi ne, %1, %c0_i32_0 : i32
    scf.if %2 {
      %c0_16 = arith.constant 0 : index
      %c0_17 = arith.constant 0 : index
      %20 = vector.load %arg2[%c0_16, %c0_17] : memref<16x32xf32, #tpu.memory_space<vmem>>, vector<16x32xf32>
      %cst_18 = arith.constant dense<0.000000e+00> : vector<16xf32>
      %21 = vector.multi_reduction <add>, %20, %cst_18 [1] : vector<16x32xf32> to vector<16xf32>
      %22 = vector.shape_cast %21 : vector<16xf32> to vector<16x1xf32>
      %cst_19 = arith.constant 3.200000e+01 : f32
      %23 = vector.broadcast %cst_19 : f32 to vector<16x1xf32>
      %24 = arith.divf %22, %23 : vector<16x1xf32>
      %25 = vector.broadcast %24 : vector<16x1xf32> to vector<16x32xf32>
      %26 = arith.subf %20, %25 : vector<16x32xf32>
      %27 = arith.mulf %26, %26 : vector<16x32xf32>
      %cst_20 = arith.constant dense<0.000000e+00> : vector<16xf32>
      %28 = vector.multi_reduction <add>, %27, %cst_20 [1] : vector<16x32xf32> to vector<16xf32>
      %29 = vector.shape_cast %28 : vector<16xf32> to vector<16x1xf32>
      %cst_21 = arith.constant 3.100000e+01 : f32
      %30 = vector.broadcast %cst_21 : f32 to vector<16x1xf32>
      %31 = arith.divf %29, %30 : vector<16x1xf32>
      %32 = math.sqrt %31 : vector<16x1xf32>
      %cst_22 = arith.constant 9.99999997E-7 : f32
      %33 = vector.broadcast %cst_22 : f32 to vector<16x1xf32>
      %34 = arith.addf %32, %33 : vector<16x1xf32>
      %cst_23 = arith.constant 1.000000e+00 : f32
      %35 = vector.broadcast %cst_23 : f32 to vector<16x1xf32>
      %36 = arith.divf %35, %34 : vector<16x1xf32>
      %c0_24 = arith.constant 0 : index
      %c0_25 = arith.constant 0 : index
      %37 = vector.load %arg3[%c0_24, %c0_25] : memref<1x32xf32, #tpu.memory_space<vmem>>, vector<1x32xf32>
      %38 = vector.broadcast %36 : vector<16x1xf32> to vector<16x32xf32>
      %39 = arith.mulf %26, %38 : vector<16x32xf32>
      %40 = vector.broadcast %37 : vector<1x32xf32> to vector<16x32xf32>
      %41 = arith.mulf %40, %39 : vector<16x32xf32>
      %c0_26 = arith.constant 0 : index
      %c0_27 = arith.constant 0 : index
      %42 = vector.load %arg4[%c0_26, %c0_27] : memref<1x32xf32, #tpu.memory_space<vmem>>, vector<1x32xf32>
      %43 = vector.broadcast %42 : vector<1x32xf32> to vector<16x32xf32>
      %44 = arith.addf %41, %43 : vector<16x32xf32>
      %45 = arith.truncf %44 : vector<16x32xf32> to vector<16x32xbf16>
      %c0_28 = arith.constant 0 : index
      %c0_29 = arith.constant 0 : index
      %46 = vector.load %arg10[%c0_28, %c0_29] : memref<16x32xbf16, #tpu.memory_space<vmem>>, vector<16x32xbf16>
      tpu.vector_store %arg10[%c0_28, %c0_29], %45 {strides = array<i32>} : memref<16x32xbf16, #tpu.memory_space<vmem>>, vector<16x32xbf16>,
      %cst_30 = arith.constant 0.000000e+00 : f32
      %47 = vector.broadcast %cst_30 : f32 to vector<16x32xf32>
      %c0_31 = arith.constant 0 : index
      %c0_32 = arith.constant 0 : index
      %48 = vector.load %arg11[%c0_31, %c0_32] : memref<16x32xf32, #tpu.memory_space<vmem>>, vector<16x32xf32>
      tpu.vector_store %arg11[%c0_31, %c0_32], %47 {strides = array<i32>} : memref<16x32xf32, #tpu.memory_space<vmem>>, vector<16x32xf32>,
    } else {
    }
    %c0 = arith.constant 0 : index
    %c0_1 = arith.constant 0 : index
    %3 = vector.load %arg10[%c0, %c0_1] : memref<16x32xbf16, #tpu.memory_space<vmem>>, vector<16x32xbf16>
    %c0_2 = arith.constant 0 : index
    %c0_3 = arith.constant 0 : index
    %4 = vector.load %arg5[%c0_2, %c0_3] : memref<32x64xbf16, #tpu.memory_space<vmem>>, vector<32x64xbf16>
    %cst = arith.constant dense<0.000000e+00> : vector<16x64xf32>
    %5 = tpu.matmul %3, %4, %cst {dimension_numbers = #tpu.dot_dimension_numbers<[1], [0], [0], [1], [0, 0, 1, 1], [], []>} : vector<16x32xbf16>, vector<32x64xbf16>, vector<16x64xf32> -> vector<16x64xf32>
    %c0_4 = arith.constant 0 : index
    %c0_5 = arith.constant 0 : index
    %6 = vector.load %arg6[%c0_4, %c0_5] : memref<1x64xf32, #tpu.memory_space<vmem>>, vector<1x64xf32>
    %7 = vector.broadcast %6 : vector<1x64xf32> to vector<16x64xf32>
    %8 = arith.addf %5, %7 : vector<16x64xf32>
    %cst_6 = arith.constant 0.000000e+00 : f32
    %9 = vector.broadcast %cst_6 : f32 to vector<16x64xf32>
    %10 = arith.maximumf %8, %9 : vector<16x64xf32>
    %c0_7 = arith.constant 0 : index
    %c0_8 = arith.constant 0 : index
    %11 = vector.load %arg11[%c0_7, %c0_8] : memref<16x32xf32, #tpu.memory_space<vmem>>, vector<16x32xf32>
    %12 = arith.truncf %10 : vector<16x64xf32> to vector<16x64xbf16>
    %c0_9 = arith.constant 0 : index
    %c0_10 = arith.constant 0 : index
    %13 = vector.load %arg7[%c0_9, %c0_10] : memref<64x32xbf16, #tpu.memory_space<vmem>>, vector<64x32xbf16>
    %cst_11 = arith.constant dense<0.000000e+00> : vector<16x32xf32>
    %14 = tpu.matmul %12, %13, %cst_11 {dimension_numbers = #tpu.dot_dimension_numbers<[1], [0], [0], [1], [0, 0, 1, 1], [], []>} : vector<16x64xbf16>, vector<64x32xbf16>, vector<16x32xf32> -> vector<16x32xf32>
    %15 = arith.addf %11, %14 : vector<16x32xf32>
    %c0_12 = arith.constant 0 : index
    %c0_13 = arith.constant 0 : index
    %16 = vector.load %arg11[%c0_12, %c0_13] : memref<16x32xf32, #tpu.memory_space<vmem>>, vector<16x32xf32>
    tpu.vector_store %arg11[%c0_12, %c0_13], %15 {strides = array<i32>} : memref<16x32xf32, #tpu.memory_space<vmem>>, vector<16x32xf32>,
    %c0_i32_14 = arith.constant 0 : i32
    %17 = arith.cmpi eq, %arg1, %c0_i32_14 : i32
    %18 = arith.extui %17 : i1 to i32
    %c0_i32_15 = arith.constant 0 : i32
    %19 = arith.cmpi ne, %18, %c0_i32_15 : i32
    scf.if %19 {
      %c0_16 = arith.constant 0 : index
      %c0_17 = arith.constant 0 : index
      %20 = vector.load %arg11[%c0_16, %c0_17] : memref<16x32xf32, #tpu.memory_space<vmem>>, vector<16x32xf32>
      %c0_18 = arith.constant 0 : index
      %c0_19 = arith.constant 0 : index
      %21 = vector.load %arg8[%c0_18, %c0_19] : memref<1x32xf32, #tpu.memory_space<vmem>>, vector<1x32xf32>
      %22 = vector.broadcast %21 : vector<1x32xf32> to vector<16x32xf32>
      %23 = arith.addf %20, %22 : vector<16x32xf32>
      %c0_20 = arith.constant 0 : index
      %c0_21 = arith.constant 0 : index
      %24 = vector.load %arg2[%c0_20, %c0_21] : memref<16x32xf32, #tpu.memory_space<vmem>>, vector<16x32xf32>
      %25 = arith.addf %23, %24 : vector<16x32xf32>
      %c0_22 = arith.constant 0 : index
      %c0_23 = arith.constant 0 : index
      %26 = vector.load %arg9[%c0_22, %c0_23] : memref<16x32xf32, #tpu.memory_space<vmem>>, vector<16x32xf32>
      tpu.vector_store %arg9[%c0_22, %c0_23], %25 {strides = array<i32>} : memref<16x32xf32, #tpu.memory_space<vmem>>, vector<16x32xf32>,
    } else {
    }
    return
  }
  func.func @transform_0(%arg0: i32, %arg1: i32) -> (i32, i32) {
    %c0_i32 = arith.constant 0 : i32
    %c0_i32_0 = arith.constant 0 : i32
    return %arg0, %c0_i32 : i32, i32
  }
  func.func @transform_1(%arg0: i32, %arg1: i32) -> (i32, i32) {
    %c0_i32 = arith.constant 0 : i32
    %c0_i32_0 = arith.constant 0 : i32
    %c0_i32_1 = arith.constant 0 : i32
    return %c0_i32, %c0_i32_0 : i32, i32
  }
  func.func @transform_2(%arg0: i32, %arg1: i32) -> (i32, i32) {
    %c0_i32 = arith.constant 0 : i32
    %c0_i32_0 = arith.constant 0 : i32
    %c0_i32_1 = arith.constant 0 : i32
    return %c0_i32, %c0_i32_0 : i32, i32
  }
  func.func @transform_3(%arg0: i32, %arg1: i32) -> (i32, i32) {
    %c0_i32 = arith.constant 0 : i32
    %c0_i32_0 = arith.constant 0 : i32
    return %c0_i32, %arg1 : i32, i32
  }
  func.func @transform_4(%arg0: i32, %arg1: i32) -> (i32, i32) {
    %c0_i32 = arith.constant 0 : i32
    %c0_i32_0 = arith.constant 0 : i32
    return %c0_i32, %arg1 : i32, i32
  }
  func.func @transform_5(%arg0: i32, %arg1: i32) -> (i32, i32) {
    %c0_i32 = arith.constant 0 : i32
    %c0_i32_0 = arith.constant 0 : i32
    return %arg1, %c0_i32 : i32, i32
  }
  func.func @transform_6(%arg0: i32, %arg1: i32) -> (i32, i32) {
    %c0_i32 = arith.constant 0 : i32
    %c0_i32_0 = arith.constant 0 : i32
    %c0_i32_1 = arith.constant 0 : i32
    return %c0_i32, %c0_i32_0 : i32, i32
  }
  func.func @transform_7(%arg0: i32, %arg1: i32) -> (i32, i32) {
    %c0_i32 = arith.constant 0 : i32
    %c0_i32_0 = arith.constant 0 : i32
    return %arg0, %c0_i32 : i32, i32
  }
}

</mosaic_0001>

<bundles_post_ra>
// kernel: decoder_layer_forward.11
= control target key start
LH: loop header
LB: loop body
LE: loop exit
PB: predicated region body
PF: predicated region fallthrough
CT: control target
= control target key end

     0   :  { %vm27_vm0 = vcmask 261120   ;;  %v230_v14 = vmov 0.0   ;;  %vm231_vm1 = vmmov 0   ;;  %vm98_vm6 = vcmask 257024   ;;  %s298_s0 = inlined_call_operand.vmem [shape: f32[16,32], index: 0, kind: input, shape index: {}]   ;;  %s299_s3 = inlined_call_operand.vmem [shape: bf16[32,32], index: 3, kind: input, shape index: {}]   ;;  %s300_s1 = inlined_call_operand.vmem [shape: f32[1,32], index: 1, kind: input, shape index: {}]   ;;  %s301_s2 = inlined_call_operand.vmem [shape: f32[1,32], index: 2, kind: input, shape index: {}]   ;;  %s302_s4 = inlined_call_operand.vmem [shape: f32[1,32], index: 4, kind: input, shape index: {}]   ;;  %s303_s5 = inlined_call_operand.vmem [shape: bf16[16,32], index: 5, kind: output, shape index: {}]  }
   0x1   :  { %v25_v0 = vld [vmem:[%s298_s0] sm:$0xff]  ;;  %v26_v1 = vld [vmem:[%s298_s0 + $0x8] sm:$0xff]  ;;  %209 = vmatprep.subr.bf16.mxu0 %v230_v14  ;;  %213 = vmatprep.mubr.msk.bf16.mxu0 %vm231_vm1, %v230_v14 }
   0x2   :  { %v28_v2 = vsel %vm27_vm0, %v25_v0, 0.0  ;;  %v31_v3 = vsel %vm27_vm0, %v26_v1, 0.0  ;;  %v219_v15 = vld [vmem:[%s299_s3 + $0x8] sm:$0xff]   ;;  %v220_v16 = vld [vmem:[%s299_s3] sm:$0xff]  }
   0x3   :  { %29 = vadd.xlane.f32.xlu0 %v28_v2  ;;  %210 = vmatpush3.bf16.msra.mxu0 %v219_v15  ;;  %v191_v34 = vld [vmem:[%s300_s1] ss:$0 sm:$0xff] }
   0x4   :  { %211 = vmatprep.subr.bf16.mxu0 %v230_v14  ;;  %v192_v36 = vld [vmem:[%s301_s2] ss:$0 sm:$0xff] }
   0x5   :  { %v195_v46 = vld [vmem:[%s302_s4] ss:$0 sm:$0xff] }
   0x7   :  { %32 = vadd.xlane.f32.xlu0 %v31_v3  ;;  %212 = vmatpush3.bf16.msra.mxu0 %v220_v16 }
  0x8c   :  { %v30_v4 = vpop.xlane.xlu0 %29 }
  0x8d   :  { %v35_v5 = vmul.f32 0.03125, %v30_v4 }
  0x8f   :  { %v37_v6 = vsub.f32 %v25_v0, %v35_v5 }
  0x90   :  { %v33_v7 = vpop.xlane.xlu0 %32 }
  0x91   :  { %v36_v8 = vmul.f32 0.03125, %v33_v7  ;;  %v39_v9 = vmul.f32 %v37_v6, %v37_v6 }
  0x93   :  { %v38_v10 = vsub.f32 %v26_v1, %v36_v8  ;;  %v41_v11 = vsel %vm27_vm0, %v39_v9, 0.0 }
  0x94   :  { %42 = vadd.xlane.f32.xlu1 %v41_v11 }
  0x95   :  { %v40_v12 = vmul.f32 %v38_v10, %v38_v10 }
  0x97   :  { %v44_v13 = vsel %vm27_vm0, %v40_v12, 0.0 }
  0x98   :  { %45 = vadd.xlane.f32.xlu1 %v44_v13 }
 0x11d   :  { %v43_v17 = vpop.xlane.xlu1 %42 }
 0x11e   :  { %v48_v18 = vmul.f32 0.032258064, %v43_v17 }
 0x120   :  { %222 = vrsqrt.f32 %v48_v18  ;;  %vm52_vm2 = vcmp.eq.f32.partialorder %v48_v18, inf  ;;  %v55_v23 = vand.u32 2147483648, %v48_v18  ;;  %vm54_vm3 = vcmp.eq.f32.partialorder %v48_v18, 0.0 }
 0x121   :  { %v46_v19 = vpop.xlane.xlu1 %45 }
 0x122   :  { %v49_v20 = vmul.f32 0.032258064, %v46_v19 }
 0x124   :  { %224 = vrsqrt.f32 %v49_v20  ;;  %vm59_vm4 = vcmp.eq.f32.partialorder %v49_v20, inf  ;;  %v62_v29 = vand.u32 2147483648, %v49_v20  ;;  %vm61_vm5 = vcmp.eq.f32.partialorder %v49_v20, 0.0 }
 0x12d   :  { %v223_v21 = vpop.eup %222 }
 0x12e   :  { %v51_v22 = vmul.f32 %v223_v21, %v48_v18 }
 0x130   :  { %v53_v24 = vsel %vm52_vm2, %v48_v18, %v51_v22 }
 0x131   :  { %v225_v25 = vpop.eup %224  ;;  %v56_v26 = vsel %vm54_vm3, %v55_v23, %v53_v24 }
 0x132   :  { %v64_v27 = vadd.f32 1e-06, %v56_v26  ;;  %v58_v28 = vmul.f32 %v225_v25, %v49_v20 }
 0x134   :  { %226 = vrcp.f32 %v64_v27  ;;  %v60_v30 = vsel %vm59_vm4, %v49_v20, %v58_v28 }
 0x135   :  { %v63_v31 = vsel %vm61_vm5, %v62_v29, %v60_v30 }
 0x136   :  { %v65_v32 = vadd.f32 1e-06, %v63_v31 }
 0x138   :  { %228 = vrcp.f32 %v65_v32 }
 0x141   :  { %v227_v33 = vpop.eup %226 }
 0x142   :  { %v71_v35 = vmul.f32 %v227_v33, %v37_v6 }
 0x144   :  { %v79_v37 = vmul.f32 %v191_v34, %v71_v35 }
 0x145   :  { %v229_v38 = vpop.eup %228 }
 0x146   :  { %v88_v39 = vadd.f32 %v192_v36, %v79_v37  ;;  %v72_v40 = vmul.f32 %v229_v38, %v38_v10 }
 0x148   :  { %v202_v41 = vpack.c.bf16 %v88_v39, %v88_v39  ;;  %v80_v42 = vmul.f32 %v191_v34, %v72_v40 }
 0x14a   :  { %v89_v43 = vadd.f32 %v192_v36, %v80_v42  ;;  %99 = vst.msk [vmem:[#allocation2] sm:$0xf] %vm98_vm6, %v202_v41 }
 0x14c   :  { %v203_v44 = vpack.c.bf16 %v89_v43, %v89_v43 }
 0x14e   :  { %100 = vst.msk [vmem:[#allocation2 + $0x4] sm:$0xf] %vm98_vm6, %v203_v44 }
 0x155   :  { %v221_v45 = vld [vmem:[#allocation2] sm:$0xff]  }
 0x156   :  { %214 = vmatmul.mubr.msk.bf16.vlgmr.msra.gmra.mxu0 %vm27_vm0, %v221_v45 }
 0x216   :  { %v169_v47 = vpop.f32.mrf.mxu0 }
 0x217   :  { %v170_v48 = vadd.f32 %v195_v46, %v169_v47 }
 0x218   :  { %v215_v49 = vpop.f32.mrf.mxu0 }
 0x219   :  { %v204_v50 = vpack.c.bf16 %v170_v48, %v170_v48 }
 0x21a   :  { %v172_v51 = vpop.f32.mrf.mxu0 }
 0x21b   :  { %185 = vst.msk [vmem:[%s303_s5] sm:$0xf] %vm98_vm6, %v204_v50  ;;  %v173_v52 = vadd.f32 %v195_v46, %v172_v51 }
 0x21c   :  { %v216_v53 = vpop.f32.mrf.mxu0 }
 0x21d   :  { %v205_v54 = vpack.c.bf16 %v173_v52, %v173_v52 }
 0x21f   :  { %186 = vst.msk [vmem:[%s303_s5 + $0x4] sm:$0xf] %vm98_vm6, %v205_v54 }

// kernel: decoder_layer_forward.8
= control target key start
LH: loop header
LB: loop body
LE: loop exit
PB: predicated region body
PF: predicated region fallthrough
CT: control target
= control target key end

     0   :  { %10 = vsyncpa [#allocation4], 0  ;;  %s401_s0 = inlined_call_operand.vmem [shape: f32[16,32], index: 0, kind: input, shape index: {}]   ;;  %s402_s1 = inlined_call_operand.hbm [shape: f32[1,32], index: 1, kind: input, shape index: {}]   ;;  %s403_s2 = inlined_call_operand.hbm [shape: f32[1,32], index: 2, kind: input, shape index: {}]   ;;  %s404_s3 = inlined_call_operand.vmem [shape: bf16[32,96], index: 3, kind: input, shape index: {}]   ;;  %s405_s4 = inlined_call_operand.hbm [shape: f32[1,96], index: 4, kind: input, shape index: {}]   ;;  %s406_s5 = inlined_call_operand.vmem [shape: bf16[16,96], index: 5, kind: output, shape index: {}]  }
   0x1   :  { %11 = vsyncpa [#allocation6], 0  ;;  %s334_s18 = smov [#allocation5]   ;;  %s335_s20 = smov [#allocation3]  }
   0x2   :  { %s30_s19 = sshll.u32 %s334_s18, 4  ;;  %s20_s21 = sshll.u32 %s335_s20, 4  ;;  %s31_s19 = int_to_ptr.vmem [resolvable:$true] %s30_s19  ;;  %s21_s21 = int_to_ptr.vmem [resolvable:$true] %s20_s21 }
   0x3   :  { %s278_s22 = scalar_lea.vmem %s31_s19, 16  ;;  %s282_s23 = scalar_lea.vmem %s31_s19, 32 }
   0x4   :  { %p279_p0 = scmp.ne.s32.totalorder %s31_s19, %s278_s22  ;;  %p283_p1 = scmp.lt.s32.totalorder %s31_s19, %s31_s19 }
   0x5   :  { %p284_p2 = scmp.lt.s32.totalorder %s282_s23, %s278_s22 }
   0x7   :  { %p285_p3 = por %p284_p2, %p283_p1 }
   0x9   :  { %p286_p4 = pnand %p285_p3, %p279_p0 }
   0xb   :  { %289 = shalt.err (!%p286_p4)
}
   0xc   :  { %33 = dma.hbm_to_vmem [thread:$0]  %s403_s2, 16, %s31_s19, [#allocation6]  }
   0xd   :  { %s298_s26 = scalar_lea.vmem %s21_s21, 16  ;;  %s302_s27 = scalar_lea.vmem %s21_s21, 32 }
   0xe   :  { %p299_p5 = scmp.ne.s32.totalorder %s21_s21, %s298_s26  ;;  %p303_p6 = scmp.lt.s32.totalorder %s21_s21, %s21_s21 }
   0xf   :  { %p304_p7 = scmp.lt.s32.totalorder %s302_s27, %s298_s26 }
  0x11   :  { %p305_p8 = por %p304_p7, %p303_p6 }
  0x13   :  { %p306_p9 = pnand %p305_p8, %p299_p5 }
  0x15   :  { %309 = shalt.err (!%p306_p9)
}
  0x16   :  { %23 = dma.hbm_to_vmem [thread:$0]  %s402_s1, 16, %s21_s21, [#allocation4]  }
  0x17   :  { %s336_s30 = smov [#allocation7]  }
  0x18   :  { %s42_s6 = sshll.u32 %s336_s30, 4  ;;  %s43_s6 = int_to_ptr.vmem [resolvable:$true] %s42_s6 }
  0x19   :  { %s318_s7 = scalar_lea.vmem %s43_s6, 16  ;;  %s322_s8 = scalar_lea.vmem %s43_s6, 32 }
  0x1a   :  { %p319_p10 = scmp.ne.s32.totalorder %s43_s6, %s318_s7  ;;  %p323_p11 = scmp.lt.s32.totalorder %s43_s6, %s43_s6 }
  0x1b   :  { %p324_p12 = scmp.lt.s32.totalorder %s322_s8, %s318_s7 }
  0x1d   :  { %p325_p13 = por %p324_p12, %p323_p11 }
  0x1f   :  { %p326_p0 = pnand %p325_p13, %p319_p10 }
  0x21   :  { %329 = shalt.err (!%p326_p0)
}
  0x22   :  { %45 = dma.hbm_to_vmem [thread:$0]  %s405_s4, 16, %s43_s6, [#allocation6]  }
  0x23   :  { %330 = dma.done.wait [#allocation4], 16  }
  0x24   :  { %331 = vsyncadd [#allocation4], 4294967280 }
  0x25   :  { %332 = dma.done.wait [#allocation6], 32  }
  0x26   :  { %333 = vsyncadd [#allocation6], 4294967264  ;;  %vm62_vm0 = vcmask 261120   ;;  %v60_v0 = vld [vmem:[%s401_s0] sm:$0xff]  ;;  %v61_v1 = vld [vmem:[%s401_s0 + $0x8] sm:$0xff]  ;;  %v337_v15 = vmov 0.0  }
  0x27   :  { %v63_v2 = vsel %vm62_vm0, %v60_v0, 0.0  ;;  %v66_v3 = vsel %vm62_vm0, %v61_v1, 0.0  ;;  %v259_v14 = vld [vmem:[%s404_s3 + $0x8] sm:$0xff]   ;;  %246 = vmatprep.subr.bf16.mxu0 %v337_v15  ;;  %vm338_vm1 = vmmov 0   ;;  %v260_v16 = vld [vmem:[%s404_s3] sm:$0xff]   ;;  %vm133_vm6 = vcmask 257024  }
  0x28   :  { %64 = vadd.xlane.f32.xlu0 %v63_v2  ;;  %250 = vmatprep.mubr.msk.bf16.mxu0 %vm338_vm1, %v337_v15  ;;  %v228_v34 = vld [vmem:[#allocation3] ss:$0 sm:$0xff]  ;;  %v229_v36 = vld [vmem:[#allocation5] ss:$0 sm:$0xff]  ;;  %v232_v46 = vld [vmem:[#allocation7] ss:$0 sm:$0xff] }
  0x29   :  { %247 = vmatpush3.bf16.msra.mxu0 %v259_v14  ;;  %vm219_vm7 = vcmask 781312  }
  0x2a   :  { %248 = vmatprep.subr.bf16.mxu0 %v337_v15 }
  0x2c   :  { %67 = vadd.xlane.f32.xlu0 %v66_v3 }
  0x2d   :  { %249 = vmatpush3.bf16.msra.mxu0 %v260_v16 }
  0xb1   :  { %v65_v4 = vpop.xlane.xlu0 %64 }
  0xb2   :  { %v70_v5 = vmul.f32 0.03125, %v65_v4 }
  0xb4   :  { %v72_v6 = vsub.f32 %v60_v0, %v70_v5 }
  0xb5   :  { %v68_v7 = vpop.xlane.xlu0 %67 }
  0xb6   :  { %v71_v8 = vmul.f32 0.03125, %v68_v7  ;;  %v74_v9 = vmul.f32 %v72_v6, %v72_v6 }
  0xb8   :  { %v73_v10 = vsub.f32 %v61_v1, %v71_v8  ;;  %v76_v11 = vsel %vm62_vm0, %v74_v9, 0.0 }
  0xb9   :  { %77 = vadd.xlane.f32.xlu1 %v76_v11 }
  0xba   :  { %v75_v12 = vmul.f32 %v73_v10, %v73_v10 }
  0xbc   :  { %v79_v13 = vsel %vm62_vm0, %v75_v12, 0.0 }
  0xbd   :  { %80 = vadd.xlane.f32.xlu1 %v79_v13 }
 0x142   :  { %v78_v17 = vpop.xlane.xlu1 %77 }
 0x143   :  { %v83_v18 = vmul.f32 0.032258064, %v78_v17 }
 0x145   :  { %262 = vrsqrt.f32 %v83_v18  ;;  %vm87_vm2 = vcmp.eq.f32.partialorder %v83_v18, inf  ;;  %v90_v23 = vand.u32 2147483648, %v83_v18  ;;  %vm89_vm3 = vcmp.eq.f32.partialorder %v83_v18, 0.0 }
 0x146   :  { %v81_v19 = vpop.xlane.xlu1 %80 }
 0x147   :  { %v84_v20 = vmul.f32 0.032258064, %v81_v19 }
 0x149   :  { %264 = vrsqrt.f32 %v84_v20  ;;  %vm94_vm4 = vcmp.eq.f32.partialorder %v84_v20, inf  ;;  %v97_v29 = vand.u32 2147483648, %v84_v20  ;;  %vm96_vm5 = vcmp.eq.f32.partialorder %v84_v20, 0.0 }
 0x152   :  { %v263_v21 = vpop.eup %262 }
 0x153   :  { %v86_v22 = vmul.f32 %v263_v21, %v83_v18 }
 0x155   :  { %v88_v24 = vsel %vm87_vm2, %v83_v18, %v86_v22 }
 0x156   :  { %v265_v25 = vpop.eup %264  ;;  %v91_v26 = vsel %vm89_vm3, %v90_v23, %v88_v24 }
 0x157   :  { %v99_v27 = vadd.f32 1e-06, %v91_v26  ;;  %v93_v28 = vmul.f32 %v265_v25, %v84_v20 }
 0x159   :  { %266 = vrcp.f32 %v99_v27  ;;  %v95_v30 = vsel %vm94_vm4, %v84_v20, %v93_v28 }
 0x15a   :  { %v98_v31 = vsel %vm96_vm5, %v97_v29, %v95_v30 }
 0x15b   :  { %v100_v32 = vadd.f32 1e-06, %v98_v31 }
 0x15d   :  { %268 = vrcp.f32 %v100_v32 }
 0x166   :  { %v267_v33 = vpop.eup %266 }
 0x167   :  { %v106_v35 = vmul.f32 %v267_v33, %v72_v6 }
 0x169   :  { %v114_v37 = vmul.f32 %v228_v34, %v106_v35 }
 0x16a   :  { %v269_v38 = vpop.eup %268 }
 0x16b   :  { %v123_v39 = vadd.f32 %v229_v36, %v114_v37  ;;  %v107_v40 = vmul.f32 %v269_v38, %v73_v10 }
 0x16d   :  { %v239_v41 = vpack.c.bf16 %v123_v39, %v123_v39  ;;  %v115_v42 = vmul.f32 %v228_v34, %v107_v40 }
 0x16f   :  { %v124_v43 = vadd.f32 %v229_v36, %v115_v42  ;;  %134 = vst.msk [vmem:[#allocation2] sm:$0xf] %vm133_vm6, %v239_v41 }
 0x171   :  { %v240_v44 = vpack.c.bf16 %v124_v43, %v124_v43 }
 0x173   :  { %135 = vst.msk [vmem:[#allocation2 + $0x4] sm:$0xf] %vm133_vm6, %v240_v44 }
 0x17a   :  { %v261_v45 = vld [vmem:[#allocation2] sm:$0xff]  }
 0x17b   :  { %251 = vmatmul.mubr.msk.bf16.vlgmr.msra.gmra.mxu0 %vm62_vm0, %v261_v45 }
 0x23b   :  { %v204_v47 = vpop.f32.mrf.mxu0 }
 0x23c   :  { %v205_v48 = vadd.f32 %v232_v46, %v204_v47 }
 0x23d   :  { %v252_v49 = vpop.f32.mrf.mxu0 }
 0x23e   :  { %v241_v50 = vpack.c.bf16 %v205_v48, %v205_v48 }
 0x23f   :  { %v207_v51 = vpop.f32.mrf.mxu0 }
 0x240   :  { %220 = vst.msk [vmem:[%s406_s5] sm:$0xf] %vm219_vm7, %v241_v50  ;;  %v208_v52 = vadd.f32 %v232_v46, %v207_v51 }
 0x241   :  { %v253_v53 = vpop.f32.mrf.mxu0 }
 0x242   :  { %v242_v54 = vpack.c.bf16 %v208_v52, %v208_v52 }
 0x244   :  { %221 = vst.msk [vmem:[%s406_s5 + $0x4] sm:$0xf] %vm219_vm7, %v242_v54 }
 0x245   :  { %226 = vsyncpa [#allocation4], 1 }
 0x246   :  { %227 = vsyncpa [#allocation6], 1 }

// kernel: decoder_layer_forward.10
= control target key start
LH: loop header
LB: loop body
LE: loop exit
PB: predicated region body
PF: predicated region fallthrough
CT: control target
= control target key end

     0   :  { %vm22_vm0 = vcmask 261120   ;;  %v144_v0 = vmov 0.0   ;;  %vm145_vm1 = vmmov 0   ;;  %s202_s1 = inlined_call_operand.vmem [shape: bf16[32,32], index: 1, kind: input, shape index: {}]   ;;  %s203_s0 = inlined_call_operand.vmem [shape: bf16[16,32], index: 0, kind: input, shape index: {}]   ;;  %s204_s2 = inlined_call_operand.vmem [shape: f32[1,32], index: 2, kind: input, shape index: {}]   ;;  %s205_s3 = inlined_call_operand.vmem [shape: f32[16,32], index: 3, kind: input, shape index: {}]   ;;  %s206_s4 = inlined_call_operand.vmem [shape: f32[16,32], index: 4, kind: output, shape index: {}]  }
   0x1   :  { %131 = vmatprep.subr.bf16.mxu0 %v144_v0  ;;  %v141_v1 = vld [vmem:[%s202_s1 + $0x8] sm:$0xff]   ;;  %135 = vmatprep.mubr.msk.bf16.mxu0 %vm145_vm1, %v144_v0  ;;  %23 = vst.msk [vmem:[#allocation2] sm:$0xff] %vm22_vm0, %v144_v0  ;;  %24 = vst.msk [vmem:[#allocation2 + $0x8] sm:$0xff] %vm22_vm0, %v144_v0  ;;  %v142_v2 = vld [vmem:[%s202_s1] sm:$0xff]  }
   0x2   :  { %132 = vmatpush3.bf16.msra.mxu0 %v141_v1  ;;  %v143_v3 = vld [vmem:[%s203_s0] sm:$0xff]   ;;  %v114_v18 = vld [vmem:[%s205_s3 + $0x8] sm:$0xff] }
   0x3   :  { %133 = vmatprep.subr.bf16.mxu0 %v144_v0  ;;  %v127_v12 = vld [vmem:[%s204_s2] ss:$0 sm:$0xff] }
   0x4   :  { %v113_v14 = vld [vmem:[%s205_s3] sm:$0xff] }
   0x6   :  { %134 = vmatpush3.bf16.msra.mxu0 %v142_v2 }
   0x8   :  { %v25_v4 = vld [vmem:[#allocation2] sm:$0xff]  ;;  %v26_v8 = vld [vmem:[#allocation2 + $0x8] sm:$0xff] }
   0x9   :  { %136 = vmatmul.mubr.msk.bf16.vlgmr.msra.gmra.mxu0 %vm22_vm0, %v143_v3 }
  0xc9   :  { %v88_v5 = vpop.f32.mrf.mxu0 }
  0xca   :  { %v95_v6 = vadd.f32 %v88_v5, %v25_v4 }
  0xcb   :  { %v137_v7 = vpop.f32.mrf.mxu0 }
  0xcc   :  { %97 = vst.msk [vmem:[#allocation2] sm:$0xff] %vm22_vm0, %v95_v6 }
  0xcd   :  { %v91_v9 = vpop.f32.mrf.mxu0 }
  0xce   :  { %v96_v10 = vadd.f32 %v91_v9, %v26_v8 }
  0xcf   :  { %v138_v11 = vpop.f32.mrf.mxu0 }
  0xd0   :  { %98 = vst.msk [vmem:[#allocation2 + $0x8] sm:$0xff] %vm22_vm0, %v96_v10 }
  0xd3   :  { %v102_v13 = vld [vmem:[#allocation2] sm:$0xff] }
  0xd4   :  { %v111_v15 = vadd.f32 %v127_v12, %v102_v13 }
  0xd6   :  { %v115_v16 = vadd.f32 %v113_v14, %v111_v15 }
  0xd7   :  { %v103_v17 = vld [vmem:[#allocation2 + $0x8] sm:$0xff] }
  0xd8   :  { %117 = vst.msk [vmem:[%s206_s4] sm:$0xff] %vm22_vm0, %v115_v16  ;;  %v112_v19 = vadd.f32 %v127_v12, %v103_v17 }
  0xda   :  { %v116_v20 = vadd.f32 %v114_v18, %v112_v19 }
  0xdc   :  { %118 = vst.msk [vmem:[%s206_s4 + $0x8] sm:$0xff] %vm22_vm0, %v116_v20 }

// kernel: decoder_layer_forward.9
= control target key start
LH: loop header
LB: loop body
LE: loop exit
PB: predicated region body
PF: predicated region fallthrough
CT: control target
= control target key end

     0   :  { %s1054_s12 = smov 0   ;;  %s1056_s13 = smov 0   ;;  %s1177_s0 = inlined_call_operand.vmem [shape: bf16[2,8,96], index: 0, kind: input, shape index: {}, may-alias: {0,1}]   ;;  %s1178_s1 = inlined_call_operand.vmem [shape: bf16[2,8,96], index: 1, kind: input, shape index: {}, may-alias: {0,1}]   ;;  %s1179_s2 = inlined_call_operand.vmem [shape: f32[2,8,8], index: 2, kind: input, shape index: {}]   ;;  %s1180_s3 = inlined_call_operand.vmem [shape: bf16[2,8,32], index: 3, kind: output, shape index: {}]  }
   0x1   :  { %s1058_s14 = smov 0  }
   0x2 LB: > { %s25_s15 = sadd.s32 1, %s1011_s13  ;;  %p843_p0 = scmp.ge.s32.totalorder %s1015_s14, 1  ;;  %s1015_s14 = sphi %s1058_s14, %s13_s14   ;;  %s1011_s13 = sphi %s1056_s13, %s1182_s13   ;;  %s1007_s12 = sphi %s1054_s12, %s1181_s12  }
   0x3   : > { %p27_p1 = scmp.ge.s32.totalorder %s25_s15, 2  ;;  %p178_p2 = scmp.lt.s32.totalorder %s1015_s14, 3 }
   0x5   : > { %s1184_s15 = smov (%p27_p1, %s25_s15), 0  ;;  %p179_p3 = pnand %p843_p0, %p178_p2 }
   0x6   : > { %p217_p4 = scmp.lt.s32.totalorder (!%p179_p3), %s1007_s12, 1  ;;  %s1019_s23 = smov (!%p179_p3), 96  }
   0x7   : > { %182 = sbr.rel (%p179_p3) target bundleno = 1545 (0x609), region = 32  ;;  %s1020_s24 = smov (!%p179_p3), 64  }
   0x8   : > { %s1021_s25 = smov (!%p179_p3), 88   ;;  %s1023_s30 = smov (!%p179_p3), 72  }
   0x9   : > { %s1024_s4 = smov (!%p179_p3), 120   ;;  %s1025_s5 = smov (!%p179_p3), 80  }
   0xa   : > { %s1026_s6 = smov (!%p179_p3), 112   ;;  %s1027_s7 = smov (!%p179_p3), 104  }
   0xb   : > { %s1028_s8 = smov (!%p179_p3), 56   ;;  %s1029_s9 = smov (!%p179_p3), 48  }
   0xc   : > { %v1017_v0 = vmov 0.0   ;;  %vm1018_vm0 = vmmov 0   ;;  %s1186_s12 = smov (!%p217_p4, %s1007_s12), 1  ;;  %vm253_vm1 = vcmask 64512   ;;  %v1022_v7 = vmov -1e+09  }
   0xd   : > { %881 = vmatprep.subr.bf16.mxu0 %v1017_v0  ;;  %883 = vmatprep.mubr.msk.bf16.mxu0 %vm1018_vm0, %v1017_v0  ;;  %s1078_s16 = sshll.u32 %s1186_s12, 2  ;;  %s846_s26 = sshll.u32 %s1186_s12, 3  ;;  %vm317_vm3 = vcmask 1043456   ;;  %vm484_vm4 = vcmask 130112   ;;  %vm608_vm5 = vcmask 195712   ;;  %vm732_vm6 = vcmask 261312  }
   0xe   : > { %887 = vmatprep.subr.bf16.mxu1 %v1017_v0  ;;  %889 = vmatprep.mubr.msk.bf16.mxu1 %vm1018_vm0, %v1017_v0  ;;  %s1084_s19 = scalar_lea.vmem %s1178_s1, %s1078_s16  ;;  %s1091_s22 = scalar_lea.vmem %s1177_s0, %s1078_s16  ;;  %vm736_vm7 = vcmask 257024  }
   0xf   : > { %v970_v1 = vld [vmem:[%s1084_s19] ss:$0 sps:$4 sm:$0xff]   ;;  %s234_s29 = scalar_lea.vmem %s1179_s2, %s846_s26  ;;  %s1030_s10 = smov 40  }
  0x10   : > { %251 = vrot.lane.b32.xlu0 %v970_v1, %s1019_s23  ;;  %v246_v4 = vld [vmem:[%s1091_s22] sm:$0xf]  ;;  %312 = vrot.lane.b32.xlu1 %v970_v1, %s1020_s24  ;;  %s1031_s11 = smov 8   ;;  %s1032_s12 = smov 16  }
  0x11   : > { %v1100_v5 = vld [vmem:[%s1084_s19] ss:$0 sps:$4 sm:$0xff]   ;;  %s1033_s17 = smov 24   ;;  %s241_s20 = scalar_lea.vmem %s1180_s3, %s1078_s16 }
  0x12   : > { %v243_v6 = vld [vmem:[%s234_s29] sm:$0xff] }
  0x13   : > { %vm244_vm2 = vcmp.gt.f32.partialorder %v243_v6, 0.0  ;;  %v1111_v15 = vld [vmem:[%s1084_s19] ss:$0 sps:$4 sm:$0xff]  }
  0x14   : > { %372 = vrot.lane.b32.xlu1 %v1100_v5, %s1021_s25  ;;  %v1106_v8 = vsel %vm244_vm2, 0.0, %v1022_v7  ;;  %v972_v23 = vld [vmem:[%s1091_s22] ss:$0 sps:$4 sm:$0xff]  }
  0x15   : > { %v1119_v24 = vld [vmem:[%s1084_s19] ss:$0 sps:$4 sm:$0xff]  }
  0x16   : > { %v975_v25 = vld [vmem:[%s1091_s22] ss:$0 sps:$4 sm:$0xff]  }
  0x17   : > { %v976_v26 = vld [vmem:[%s1091_s22] ss:$0 sps:$4 sm:$0xff]  }
  0x82   : > { %v252_v2 = vpop.permute.xlu0 %251  ;;  %v313_v16 = vpop.permute.xlu1 %312 }
  0x83   : > { %v258_v3 = vsel %vm253_vm1, %v252_v2, 0  ;;  %v319_v17 = vsel %vm317_vm3, %v313_v16, 0 }
  0x84   : > { %882 = vmatpush3.bf16.xpose.msra.mxu0 %v258_v3  ;;  %888 = vmatpush3.bf16.msra.mxu1 %v319_v17 }
  0x85   : > { %899 = vmatprep.subr.bf16.mxu0 %v1017_v0  ;;  %893 = vmatprep.subr.bf16.mxu1 %v1017_v0 }
  0x86   : > { %v373_v27 = vpop.permute.xlu1 %372 }
  0x87   : > { %v378_v33 = vsel %vm253_vm1, %v373_v27, 0 }
  0x8b   : > { %884 = vmatmul.mubr.msk.bf16.vlgmr.msra.gmra.mxu0 %vm253_vm1, %v246_v4 }
  0x8c   : > { %901 = vmatprep.mubr.msk.bf16.mxu0 %vm1018_vm0, %v1017_v0 }
 0x14b   : > { %v294_v9 = vpop.f32.mrf.mxu0 }
 0x14c   : > { %v295_v10 = vadd.f32 %v294_v9, %v1106_v8 }
 0x14d   : > { %v885_v11 = vpop.f32.mrf.mxu0 }
 0x14e   : > { %v300_v12 = vsel %vm253_vm1, %v295_v10, -inf }
 0x14f   : > { %301 = vmax.xlane.f32.xlu0 %v300_v12  ;;  %v297_v13 = vpop.f32.mrf.mxu0 }
 0x151   : > { %v886_v14 = vpop.f32.mrf.mxu0 }
 0x165   : > { %620 = vrot.lane.b32.xlu0 %v1111_v15, %s1023_s30 }
 0x1d8   : > { %v302_v18 = vpop.xlane.xlu0 %301 }
 0x1d9   : > { %v303_v19 = vsub.f32 %v295_v10, %v302_v18 }
 0x1db   : > { %v304_v20 = vmul.f32 1.442695, %v303_v19 }
 0x1dc   : > { %v621_v36 = vpop.permute.xlu0 %620 }
 0x1dd   : > { %977 = vpow2.f32 %v304_v20  ;;  %v626_v38 = vsel %vm253_vm1, %v621_v36, 0 }
 0x1ea   : > { %v978_v21 = vpop.eup %977 }
 0x1eb   : > { %v306_v22 = vsel %vm253_vm1, %v978_v21, 0.0 }
 0x1ec   : > { %307 = vadd.xlane.f32.xlu1 %v306_v22 }
 0x1fd   : > { %367 = vrot.lane.b32.xlu1 %v972_v23, %s1024_s4 }
 0x201   : > { %496 = vrot.lane.b32.xlu1 %v1119_v24, %s1025_s5 }
 0x205   : > { %491 = vrot.lane.b32.xlu1 %v975_v25, %s1026_s6 }
 0x209   : > { %615 = vrot.lane.b32.xlu1 %v976_v26, %s1027_s7 }
 0x275   : > { %v308_v28 = vpop.xlane.xlu1 %307 }
 0x276   : > { %979 = vrcp.f32 %v308_v28 }
 0x279   : > { %v368_v31 = vpop.permute.xlu1 %367 }
 0x27d   : > { %v497_v34 = vpop.permute.xlu1 %496 }
 0x27e   : > { %v502_v35 = vsel %vm253_vm1, %v497_v34, 0 }
 0x281   : > { %v492_v37 = vpop.permute.xlu1 %491 }
 0x283   : > { %v980_v29 = vpop.eup %979 }
 0x284   : > { %v310_v30 = vmul.f32 %v980_v29, %v978_v21 }
 0x285   : > { %v616_v39 = vpop.permute.xlu1 %615 }
 0x286   : > { %v311_v32 = vpack.c.bf16 %v310_v30, %v310_v30 }
 0x288   : > { %890 = vmatmul.mubr.msk.bf16.vlgmr.msra.gmra.mxu1 %vm253_vm1, %v311_v32 }
 0x289   : > { %894 = vmatpush3.bf16.xpose.msra.mxu1 %v378_v33  ;;  %895 = vmatprep.mubr.msk.bf16.mxu1 %vm1018_vm0, %v1017_v0 }
 0x28a   : > { %905 = vmatprep.subr.bf16.mxu1 %v1017_v0 }
 0x290   : > { %896 = vmatmul.mubr.msk.bf16.vlgmr.msra.gmra.mxu1 %vm253_vm1, %v368_v31 }
 0x291   : > { %906 = vmatpush3.bf16.xpose.msra.mxu1 %v502_v35  ;;  %907 = vmatprep.mubr.msk.bf16.mxu1 %vm1018_vm0, %v1017_v0 }
 0x292   : > { %917 = vmatprep.subr.bf16.mxu1 %v1017_v0 }
 0x298   : > { %908 = vmatmul.mubr.msk.bf16.vlgmr.msra.gmra.mxu1 %vm253_vm1, %v492_v37 }
 0x299   : > { %918 = vmatpush3.bf16.xpose.msra.mxu1 %v626_v38  ;;  %919 = vmatprep.mubr.msk.bf16.mxu1 %vm1018_vm0, %v1017_v0 }
 0x2a0   : > { %920 = vmatmul.mubr.msk.bf16.vlgmr.msra.gmra.mxu1 %vm253_vm1, %v616_v39 }
 0x348   : > { %v355_v40 = vpop.f32.mrf.mxu1 }
 0x349   : > { %361 = vst.msk [vmem:[#allocation2] sm:$0xff] %vm253_vm1, %v355_v40 }
 0x34a   : > { %v891_v41 = vpop.f32.mrf.mxu1 }
 0x34c   : > { %v358_v42 = vpop.f32.mrf.mxu1 }
 0x34e   : > { %v892_v43 = vpop.f32.mrf.mxu1 }
 0x350   : > { %v414_v44 = vpop.f32.mrf.mxu1 }
 0x351   : > { %v415_v45 = vadd.f32 %v414_v44, %v1106_v8 }
 0x352   : > { %v897_v46 = vpop.f32.mrf.mxu1 }
 0x353   : > { %v420_v47 = vsel %vm253_vm1, %v415_v45, -inf }
 0x354   : > { %421 = vmax.xlane.f32.xlu1 %v420_v47  ;;  %v417_v48 = vpop.f32.mrf.mxu1 }
 0x356   : > { %v898_v49 = vpop.f32.mrf.mxu1 }
 0x358   : > { %v538_v50 = vpop.f32.mrf.mxu1 }
 0x359   : > { %v539_v51 = vadd.f32 %v538_v50, %v1106_v8 }
 0x35a   : > { %v909_v52 = vpop.f32.mrf.mxu1 }
 0x35b   : > { %v544_v53 = vsel %vm253_vm1, %v539_v51, -inf }
 0x35c   : > { %545 = vmax.xlane.f32.xlu0 %v544_v53  ;;  %v541_v54 = vpop.f32.mrf.mxu1 }
 0x35e   : > { %v910_v55 = vpop.f32.mrf.mxu1 }
 0x360   : > { %v662_v56 = vpop.f32.mrf.mxu1 }
 0x361   : > { %v663_v57 = vadd.f32 %v662_v56, %v1106_v8 }
 0x362   : > { %v921_v58 = vpop.f32.mrf.mxu1 }
 0x363   : > { %v668_v59 = vsel %vm253_vm1, %v663_v57, -inf }
 0x364   : > { %669 = vmax.xlane.f32.xlu1 %v668_v59  ;;  %v665_v60 = vpop.f32.mrf.mxu1 }
 0x366   : > { %v922_v61 = vpop.f32.mrf.mxu1 }
 0x3dd   : > { %v422_v62 = vpop.xlane.xlu1 %421 }
 0x3de   : > { %v423_v63 = vsub.f32 %v415_v45, %v422_v62 }
 0x3e0   : > { %v424_v1 = vmul.f32 1.442695, %v423_v63 }
 0x3e2   : > { %981 = vpow2.f32 %v424_v1 }
 0x3e5   : > { %v546_v10 = vpop.xlane.xlu0 %545 }
 0x3e6   : > { %v547_v11 = vsub.f32 %v539_v51, %v546_v10 }
 0x3e8   : > { %v548_v12 = vmul.f32 1.442695, %v547_v11 }
 0x3ed   : > { %v670_v2 = vpop.xlane.xlu1 %669 }
 0x3ee   : > { %v671_v3 = vsub.f32 %v663_v57, %v670_v2 }
 0x3ef   : > { %v982_v4 = vpop.eup %981 }
 0x3f0   : > { %v672_v6 = vmul.f32 1.442695, %v671_v3  ;;  %v426_v7 = vsel %vm253_vm1, %v982_v4, 0.0 }
 0x3f1   : > { %427 = vadd.xlane.f32.xlu1 %v426_v7 }
 0x3f2   : > { %983 = vpow2.f32 %v672_v6 }
 0x3f3   : > { %985 = vpow2.f32 %v548_v12 }
 0x3ff   : > { %v984_v9 = vpop.eup %983 }
 0x400   : > { %v674_v8 = vsel %vm253_vm1, %v984_v9, 0.0  ;;  %v986_v13 = vpop.eup %985 }
 0x401   : > { %675 = vadd.xlane.f32.xlu0 %v674_v8  ;;  %v550_v14 = vsel %vm253_vm1, %v986_v13, 0.0 }
 0x402   : > { %432 = vrot.lane.b32.xlu1 %v1100_v5, %s1028_s8 }
 0x417   : > { %556 = vrot.lane.b32.xlu0 %v1119_v24, %s1029_s9 }
 0x426   : > { %551 = vadd.xlane.f32.xlu1 %v550_v14 }
 0x437   : > { %680 = vrot.lane.b32.xlu1 %v1111_v15, %s1030_s10 }
 0x47a   : > { %v428_v16 = vpop.xlane.xlu1 %427 }
 0x47b   : > { %987 = vrcp.f32 %v428_v16 }
 0x47e   : > { %v433_v17 = vpop.permute.xlu1 %432 }
 0x47f   : > { %v438_v18 = vsel %vm317_vm3, %v433_v17, 0 }
 0x480   : > { %900 = vmatpush3.bf16.msra.mxu0 %v438_v18 }
 0x481   : > { %911 = vmatprep.subr.bf16.mxu0 %v1017_v0 }
 0x488   : > { %v988_v5 = vpop.eup %987 }
 0x489   : > { %v430_v19 = vmul.f32 %v988_v5, %v982_v4 }
 0x48a   : > { %v676_v20 = vpop.xlane.xlu0 %675 }
 0x48b   : > { %v431_v21 = vpack.c.bf16 %v430_v19, %v430_v19 }
 0x48d   : > { %902 = vmatmul.mubr.msk.bf16.vlgmr.msra.gmra.mxu0 %vm253_vm1, %v431_v21 }
 0x48e   : > { %v557_v22 = vpop.permute.xlu0 %556  ;;  %913 = vmatprep.mubr.msk.bf16.mxu0 %vm1018_vm0, %v1017_v0 }
 0x48f   : > { %v562_v15 = vsel %vm317_vm3, %v557_v22, 0 }
 0x490   : > { %912 = vmatpush3.bf16.msra.mxu0 %v562_v15 }
 0x491   : > { %923 = vmatprep.subr.bf16.mxu0 %v1017_v0 }
 0x4af   : > { %v552_v23 = vpop.xlane.xlu1 %551 }
 0x4b0   : > { %989 = vrcp.f32 %v552_v23 }
 0x4b1   : > { %991 = vrcp.f32 %v676_v20 }
 0x4b3   : > { %v681_v25 = vpop.permute.xlu1 %680 }
 0x4b4   : > { %v686_v27 = vsel %vm317_vm3, %v681_v25, 0 }
 0x4bd   : > { %v990_v24 = vpop.eup %989 }
 0x4be   : > { %v554_v26 = vmul.f32 %v990_v24, %v986_v13  ;;  %v992_v29 = vpop.eup %991 }
 0x4bf   : > { %v678_v30 = vmul.f32 %v992_v29, %v984_v9 }
 0x4c0   : > { %v555_v28 = vpack.c.bf16 %v554_v26, %v554_v26 }
 0x4c1   : > { %v679_v31 = vpack.c.bf16 %v678_v30, %v678_v30 }
 0x4c2   : > { %914 = vmatmul.mubr.msk.bf16.vlgmr.msra.gmra.mxu0 %vm253_vm1, %v555_v28 }
 0x4c3   : > { %924 = vmatpush3.bf16.msra.mxu0 %v686_v27  ;;  %925 = vmatprep.mubr.msk.bf16.mxu0 %vm1018_vm0, %v1017_v0 }
 0x4ca   : > { %926 = vmatmul.mubr.msk.bf16.vlgmr.msra.gmra.mxu0 %vm253_vm1, %v679_v31 }
 0x54d   : > { %v474_v32 = vpop.f32.mrf.mxu0 }
 0x54e   : > { %481 = vrot.lane.b32.xlu1 %v474_v32, %s1031_s11 }
 0x54f   : > { %v903_v33 = vpop.f32.mrf.mxu0 }
 0x551   : > { %v477_v34 = vpop.f32.mrf.mxu0 }
 0x553   : > { %v904_v35 = vpop.f32.mrf.mxu0 }
 0x582   : > { %v598_v36 = vpop.f32.mrf.mxu0 }
 0x583   : > { %605 = vrot.lane.b32.xlu0 %v598_v36, %s1032_s12 }
 0x584   : > { %v915_v37 = vpop.f32.mrf.mxu0 }
 0x586   : > { %v601_v38 = vpop.f32.mrf.mxu0 }
 0x588   : > { %v916_v39 = vpop.f32.mrf.mxu0 }
 0x58a   : > { %v722_v40 = vpop.f32.mrf.mxu0 }
 0x58b   : > { %729 = vrot.lane.b32.xlu1 %v722_v40, %s1033_s17 }
 0x58c   : > { %v927_v0 = vpop.f32.mrf.mxu0 }
 0x58e   : > { %v725_v41 = vpop.f32.mrf.mxu0 }
 0x590   : > { %v928_v42 = vpop.f32.mrf.mxu0 }
 0x5c0   : > { %v482_v43 = vpop.permute.xlu1 %481 }
 0x5c1   : > { %485 = vst.msk [vmem:[#allocation2] sm:$0xff] %vm484_vm4, %v482_v43 }
 0x5f5   : > { %v606_v44 = vpop.permute.xlu0 %605 }
 0x5f6   : > { %609 = vst.msk [vmem:[#allocation2] sm:$0xff] %vm608_vm5, %v606_v44 }
 0x5fd   : > { %v730_v45 = vpop.permute.xlu1 %729 }
 0x5fe   : > { %733 = vst.msk [vmem:[#allocation2] sm:$0xff] %vm732_vm6, %v730_v45 }
 0x605   : > { %v734_v46 = vld [vmem:[#allocation2] sm:$0xff] }
 0x606   : > { %v735_v47 = vpack.c.bf16 %v734_v46, %v734_v46 }
 0x608   : > { %737 = vst.msk [vmem:[%s241_s20] sm:$0xf] %vm736_vm7, %v735_v47 }
 0x609 PF: > { %s13_s14 = sadd.s32 1, %s1015_s14   ;;  %s1181_s12 = smov %s1011_s13 }
 0x60a   : > { %p10_p5 = scmp.ge.s32.totalorder %s13_s14, 4   ;;  %s1182_s13 = smov %s1184_s15 }
 0x60c   :  { %12 = sbr.rel (!%p10_p5) target bundleno = 2 (0x2), region = 68 }

// kernel: decoder_layer_forward.12
= control target key start
LH: loop header
LB: loop body
LE: loop exit
PB: predicated region body
PF: predicated region fallthrough
CT: control target
= control target key end

     0   :  { %vm19_vm0 = vcmask 523264   ;;  %v151_v0 = vmov 0.0   ;;  %vm152_vm1 = vmmov 0   ;;  %vm47_vm2 = vcmask 261120   ;;  %s195_s1 = inlined_call_operand.vmem [shape: bf16[32,64], index: 1, kind: input, shape index: {}]   ;;  %s196_s0 = inlined_call_operand.vmem [shape: bf16[16,32], index: 0, kind: input, shape index: {}]   ;;  %s197_s2 = inlined_call_operand.vmem [shape: f32[1,64], index: 2, kind: input, shape index: {}]   ;;  %s198_s3 = inlined_call_operand.vmem [shape: bf16[16,64], index: 3, kind: output, shape index: {}]  }
   0x1   :  { %138 = vmatprep.subr.bf16.mxu0 %v151_v0  ;;  %v148_v1 = vld [vmem:[%s195_s1 + $0x8] sm:$0xff]   ;;  %142 = vmatprep.mubr.msk.bf16.mxu0 %vm152_vm1, %v151_v0  ;;  %20 = vst.msk [vmem:[#allocation2] sm:$0xff] %vm19_vm0, %v151_v0  ;;  %21 = vst.msk [vmem:[#allocation2 + $0x8] sm:$0xff] %vm19_vm0, %v151_v0  ;;  %v149_v2 = vld [vmem:[%s195_s1] sm:$0xff]   ;;  %vm119_vm3 = vcmask 519168  }
   0x2   :  { %139 = vmatpush3.bf16.msra.mxu0 %v148_v1  ;;  %v150_v3 = vld [vmem:[%s196_s0] sm:$0xff]  }
   0x3   :  { %140 = vmatprep.subr.bf16.mxu0 %v151_v0  ;;  %v130_v12 = vld [vmem:[%s197_s2] ss:$0 sm:$0xff] }
   0x6   :  { %141 = vmatpush3.bf16.msra.mxu0 %v149_v2 }
   0x8   :  { %v22_v4 = vld [vmem:[#allocation2] sm:$0xff]  ;;  %v23_v8 = vld [vmem:[#allocation2 + $0x8] sm:$0xff] }
   0x9   :  { %143 = vmatmul.mubr.msk.bf16.vlgmr.msra.gmra.mxu0 %vm47_vm2, %v150_v3 }
  0xc9   :  { %v85_v5 = vpop.f32.mrf.mxu0 }
  0xca   :  { %v92_v6 = vadd.f32 %v85_v5, %v22_v4 }
  0xcb   :  { %v144_v7 = vpop.f32.mrf.mxu0 }
  0xcc   :  { %95 = vst.msk [vmem:[#allocation2] sm:$0xff] %vm19_vm0, %v92_v6 }
  0xcd   :  { %v88_v9 = vpop.f32.mrf.mxu0 }
  0xce   :  { %v93_v10 = vadd.f32 %v88_v9, %v23_v8 }
  0xcf   :  { %v145_v11 = vpop.f32.mrf.mxu0 }
  0xd0   :  { %96 = vst.msk [vmem:[#allocation2 + $0x8] sm:$0xff] %vm19_vm0, %v93_v10 }
  0xd3   :  { %v100_v13 = vld [vmem:[#allocation2] sm:$0xff] }
  0xd4   :  { %v109_v14 = vadd.f32 %v130_v12, %v100_v13 }
  0xd6   :  { %v133_v15 = vpack.c.bf16 %v109_v14, %v109_v14 }
  0xd7   :  { %v101_v16 = vld [vmem:[#allocation2 + $0x8] sm:$0xff] }
  0xd8   :  { %120 = vst.msk [vmem:[%s198_s3] sm:$0xf] %vm119_vm3, %v133_v15  ;;  %v110_v17 = vadd.f32 %v130_v12, %v101_v16 }
  0xda   :  { %v134_v18 = vpack.c.bf16 %v110_v17, %v110_v17 }
  0xdc   :  { %121 = vst.msk [vmem:[%s198_s3 + $0x4] sm:$0xf] %vm119_vm3, %v134_v18 }

// kernel: decoder_layer_forward.13
= control target key start
LH: loop header
LB: loop body
LE: loop exit
PB: predicated region body
PF: predicated region fallthrough
CT: control target
= control target key end

     0   :  { %s1029_s12 = smov 0   ;;  %s1031_s13 = smov 0   ;;  %s1152_s0 = inlined_call_operand.vmem [shape: bf16[2,8,32], index: 0, kind: input, shape index: {}]   ;;  %s1153_s1 = inlined_call_operand.vmem [shape: bf16[2,8,64], index: 1, kind: input, shape index: {}]   ;;  %s1154_s2 = inlined_call_operand.vmem [shape: f32[2,1,8], index: 2, kind: input, shape index: {}]   ;;  %s1155_s3 = inlined_call_operand.vmem [shape: bf16[2,8,32], index: 3, kind: output, shape index: {}]  }
   0x1   :  { %s1033_s14 = smov 0  }
   0x2 LB: > { %s25_s15 = sadd.s32 1, %s990_s13  ;;  %p827_p0 = scmp.ge.s32.totalorder %s994_s14, 1  ;;  %s994_s14 = sphi %s1033_s14, %s13_s14   ;;  %s990_s13 = sphi %s1031_s13, %s1157_s13   ;;  %s986_s12 = sphi %s1029_s12, %s1156_s12  }
   0x3   : > { %p27_p1 = scmp.ge.s32.totalorder %s25_s15, 2  ;;  %p172_p2 = scmp.lt.s32.totalorder %s994_s14, 3 }
   0x5   : > { %s1159_s15 = smov (%p27_p1, %s25_s15), 0  ;;  %p173_p3 = pnand %p827_p0, %p172_p2 }
   0x6   : > { %p207_p4 = scmp.lt.s32.totalorder (!%p173_p3), %s986_s12, 1  ;;  %s999_s26 = smov (!%p173_p3), 96  }
   0x7   : > { %176 = sbr.rel (%p173_p3) target bundleno = 1385 (0x569), region = 32  ;;  %s1000_s27 = smov (!%p173_p3), 120  }
   0x8   : > { %s1001_s28 = smov (!%p173_p3), 112   ;;  %s1002_s29 = smov (!%p173_p3), 104  }
   0x9   : > { %s1003_s30 = smov (!%p173_p3), 88   ;;  %s1004_s4 = smov (!%p173_p3), 72  }
   0xa   : > { %s1005_s5 = smov (!%p173_p3), 80   ;;  %s1006_s6 = smov (!%p173_p3), 8  }
   0xb   : > { %s1007_s7 = smov (!%p173_p3), 16   ;;  %s1008_s8 = smov (!%p173_p3), 24  }
   0xc   : > { %v996_v0 = vmov 0.0   ;;  %vm997_vm0 = vmmov 0   ;;  %s1161_s12 = smov (!%p207_p4, %s986_s12), 1  ;;  %vm240_vm1 = vcmask 64512   ;;  %v235_v4 = vlaneseq }
   0xd   : > { %864 = vmatprep.subr.bf16.mxu0 %v996_v0  ;;  %866 = vmatprep.mubr.msk.bf16.mxu0 %vm997_vm0, %v996_v0  ;;  %s1053_s16 = sshll.u32 %s1161_s12, 2  ;;  %s220_s25 = scalar_lea.vmem %s1154_s2, %s1161_s12  ;;  %v998_v8 = vmov -1e+09   ;;  %vm307_vm3 = vcmask 1043456   ;;  %vm474_vm4 = vcmask 130112   ;;  %vm598_vm5 = vcmask 195712  }
   0xe   : > { %870 = vmatprep.subr.bf16.mxu1 %v996_v0  ;;  %872 = vmatprep.mubr.msk.bf16.mxu1 %vm997_vm0, %v996_v0  ;;  %s1059_s19 = scalar_lea.vmem %s1153_s1, %s1053_s16  ;;  %s1067_s22 = scalar_lea.vmem %s1152_s0, %s1053_s16  ;;  %v229_v5 = vld [vmem:[%s220_s25] sm:$0x1]  ;;  %v236_v6 = vshrl.u32 %v235_v4, 7  ;;  %vm722_vm6 = vcmask 261312   ;;  %vm726_vm7 = vcmask 257024  }
   0xf   : > { %v233_v1 = vld [vmem:[%s1059_s19] sm:$0xf]  ;;  %vm230_vm2 = vcmp.gt.f32.partialorder %v229_v5, 0.0  ;;  %s227_s11 = scalar_lea.vmem %s1155_s3, %s1053_s16 }
  0x10   : > { %v245_v2 = vsel %vm240_vm1, %v233_v1, 0  ;;  %v232_v3 = vld [vmem:[%s1067_s22] sm:$0xf]  ;;  %v237_v7 = vsub.s32 0, %v236_v6  ;;  %v231_v9 = vsel %vm230_vm2, 0.0, %v998_v8  ;;  %v832_v17 = vcombine.low %v233_v1, %v233_v1 }
  0x11   : > { %865 = vmatpush3.bf16.xpose.msra.mxu0 %v245_v2  ;;  %v1082_v18 = vld [vmem:[%s1059_s19] ss:$0 sps:$4 sm:$0xff]  }
  0x12   : > { %882 = vmatprep.subr.bf16.mxu0 %v996_v0  ;;  %v1077_v10 = vrot.slane %v231_v9, %v237_v7  ;;  %302 = vrot.lane.b32.xlu1 %v832_v17, %s999_s26  ;;  %v1086_v19 = vld [vmem:[%s1059_s19] ss:$0 sps:$4 sm:$0xff]  }
  0x13   : > { %v953_v20 = vld [vmem:[%s1067_s22] ss:$0 sps:$4 sm:$0xff]  }
  0x14   : > { %v1091_v21 = vld [vmem:[%s1059_s19] ss:$0 sps:$4 sm:$0xff]  }
  0x15   : > { %v955_v22 = vld [vmem:[%s1067_s22] ss:$0 sps:$4 sm:$0xff]  }
  0x16   : > { %362 = vrot.lane.b32.xlu1 %v1082_v18, %s1000_s27  ;;  %v952_v30 = vld [vmem:[%s1067_s22] ss:$0 sps:$4 sm:$0xff]  }
  0x18   : > { %867 = vmatmul.mubr.msk.bf16.vlgmr.msra.gmra.mxu0 %vm240_vm1, %v232_v3 }
  0x19   : > { %884 = vmatprep.mubr.msk.bf16.mxu0 %vm997_vm0, %v996_v0 }
  0x1a   : > { %486 = vrot.lane.b32.xlu1 %v1086_v19, %s1001_s28 }
  0x1e   : > { %481 = vrot.lane.b32.xlu1 %v953_v20, %s1001_s28 }
  0x22   : > { %610 = vrot.lane.b32.xlu1 %v1091_v21, %s1002_s29 }
  0x26   : > { %605 = vrot.lane.b32.xlu1 %v955_v22, %s1002_s29 }
  0x84   : > { %v303_v28 = vpop.permute.xlu1 %302 }
  0x85   : > { %v309_v29 = vsel %vm307_vm3, %v303_v28, 0 }
  0x86   : > { %871 = vmatpush3.bf16.msra.mxu1 %v309_v29 }
  0x87   : > { %876 = vmatprep.subr.bf16.mxu1 %v996_v0 }
  0x88   : > { %v363_v33 = vpop.permute.xlu1 %362 }
  0x89   : > { %v368_v35 = vsel %vm240_vm1, %v363_v33, 0 }
  0x8c   : > { %v487_v37 = vpop.permute.xlu1 %486 }
  0x8d   : > { %v492_v40 = vsel %vm240_vm1, %v487_v37, 0 }
  0x90   : > { %v482_v39 = vpop.permute.xlu1 %481 }
  0x94   : > { %v611_v41 = vpop.permute.xlu1 %610 }
  0x95   : > { %v616_v42 = vsel %vm240_vm1, %v611_v41, 0 }
  0x98   : > { %v606_v43 = vpop.permute.xlu1 %605 }
  0xd8   : > { %v281_v11 = vpop.f32.mrf.mxu0 }
  0xd9   : > { %v282_v12 = vadd.f32 %v281_v11, %v1077_v10 }
  0xda   : > { %v868_v13 = vpop.f32.mrf.mxu0 }
  0xdb   : > { %v287_v14 = vsel %vm240_vm1, %v282_v12, -inf }
  0xdc   : > { %288 = vmax.xlane.f32.xlu0 %v287_v14  ;;  %v284_v15 = vpop.f32.mrf.mxu0 }
  0xde   : > { %v869_v16 = vpop.f32.mrf.mxu0 }
 0x165   : > { %v289_v23 = vpop.xlane.xlu0 %288 }
 0x166   : > { %v290_v24 = vsub.f32 %v282_v12, %v289_v23 }
 0x168   : > { %v291_v25 = vmul.f32 1.442695, %v290_v24 }
 0x16a   : > { %956 = vpow2.f32 %v291_v25 }
 0x177   : > { %v957_v26 = vpop.eup %956 }
 0x178   : > { %v293_v27 = vsel %vm240_vm1, %v957_v26, 0.0 }
 0x179   : > { %294 = vadd.xlane.f32.xlu0 %v293_v27 }
 0x18f   : > { %357 = vrot.lane.b32.xlu0 %v952_v30, %s1000_s27 }
 0x202   : > { %v295_v31 = vpop.xlane.xlu0 %294 }
 0x203   : > { %958 = vrcp.f32 %v295_v31 }
 0x206   : > { %v358_v38 = vpop.permute.xlu0 %357 }
 0x210   : > { %v959_v32 = vpop.eup %958 }
 0x211   : > { %v297_v34 = vmul.f32 %v959_v32, %v957_v26 }
 0x213   : > { %v298_v36 = vpack.c.bf16 %v297_v34, %v297_v34 }
 0x215   : > { %873 = vmatmul.mubr.msk.bf16.vlgmr.msra.gmra.mxu1 %vm240_vm1, %v298_v36 }
 0x216   : > { %877 = vmatpush3.bf16.xpose.msra.mxu1 %v368_v35  ;;  %878 = vmatprep.mubr.msk.bf16.mxu1 %vm997_vm0, %v996_v0 }
 0x217   : > { %888 = vmatprep.subr.bf16.mxu1 %v996_v0 }
 0x21d   : > { %879 = vmatmul.mubr.msk.bf16.vlgmr.msra.gmra.mxu1 %vm240_vm1, %v358_v38 }
 0x21e   : > { %889 = vmatpush3.bf16.xpose.msra.mxu1 %v492_v40  ;;  %890 = vmatprep.mubr.msk.bf16.mxu1 %vm997_vm0, %v996_v0 }
 0x21f   : > { %900 = vmatprep.subr.bf16.mxu1 %v996_v0 }
 0x225   : > { %891 = vmatmul.mubr.msk.bf16.vlgmr.msra.gmra.mxu1 %vm240_vm1, %v482_v39 }
 0x226   : > { %901 = vmatpush3.bf16.xpose.msra.mxu1 %v616_v42  ;;  %902 = vmatprep.mubr.msk.bf16.mxu1 %vm997_vm0, %v996_v0 }
 0x22d   : > { %903 = vmatmul.mubr.msk.bf16.vlgmr.msra.gmra.mxu1 %vm240_vm1, %v606_v43 }
 0x2d5   : > { %v345_v44 = vpop.f32.mrf.mxu1 }
 0x2d6   : > { %351 = vst.msk [vmem:[#allocation2] sm:$0xff] %vm240_vm1, %v345_v44 }
 0x2d7   : > { %v874_v45 = vpop.f32.mrf.mxu1 }
 0x2d9   : > { %v348_v46 = vpop.f32.mrf.mxu1 }
 0x2db   : > { %v875_v47 = vpop.f32.mrf.mxu1 }
 0x2dd   : > { %v404_v48 = vpop.f32.mrf.mxu1 }
 0x2de   : > { %v405_v49 = vadd.f32 %v404_v48, %v1077_v10 }
 0x2df   : > { %v880_v50 = vpop.f32.mrf.mxu1 }
 0x2e0   : > { %v410_v51 = vsel %vm240_vm1, %v405_v49, -inf }
 0x2e1   : > { %411 = vmax.xlane.f32.xlu1 %v410_v51  ;;  %v407_v52 = vpop.f32.mrf.mxu1 }
 0x2e3   : > { %v881_v53 = vpop.f32.mrf.mxu1 }
 0x2e5   : > { %v528_v54 = vpop.f32.mrf.mxu1 }
 0x2e6   : > { %v529_v55 = vadd.f32 %v528_v54, %v1077_v10 }
 0x2e7   : > { %v892_v56 = vpop.f32.mrf.mxu1 }
 0x2e8   : > { %v534_v57 = vsel %vm240_vm1, %v529_v55, -inf }
 0x2e9   : > { %535 = vmax.xlane.f32.xlu0 %v534_v57  ;;  %v531_v58 = vpop.f32.mrf.mxu1 }
 0x2eb   : > { %v893_v59 = vpop.f32.mrf.mxu1 }
 0x2ed   : > { %v652_v60 = vpop.f32.mrf.mxu1 }
 0x2ee   : > { %v653_v61 = vadd.f32 %v652_v60, %v1077_v10 }
 0x2ef   : > { %v904_v62 = vpop.f32.mrf.mxu1 }
 0x2f0   : > { %v658_v63 = vsel %vm240_vm1, %v653_v61, -inf }
 0x2f1   : > { %659 = vmax.xlane.f32.xlu1 %v658_v63  ;;  %v655_v1 = vpop.f32.mrf.mxu1 }
 0x2f3   : > { %v905_v2 = vpop.f32.mrf.mxu1 }
 0x302   : > { %422 = vrot.lane.b32.xlu1 %v1082_v18, %s1003_s30 }
 0x36a   : > { %v412_v3 = vpop.xlane.xlu1 %411 }
 0x36b   : > { %v413_v4 = vsub.f32 %v405_v49, %v412_v3 }
 0x36d   : > { %v414_v5 = vmul.f32 1.442695, %v413_v4 }
 0x36f   : > { %960 = vpow2.f32 %v414_v5 }
 0x372   : > { %v536_v6 = vpop.xlane.xlu0 %535 }
 0x373   : > { %v537_v7 = vsub.f32 %v529_v55, %v536_v6 }
 0x375   : > { %v538_v8 = vmul.f32 1.442695, %v537_v7 }
 0x377   : > { %962 = vpow2.f32 %v538_v8 }
 0x37a   : > { %v660_v9 = vpop.xlane.xlu1 %659 }
 0x37b   : > { %v661_v11 = vsub.f32 %v653_v61, %v660_v9 }
 0x37c   : > { %v961_v10 = vpop.eup %960 }
 0x37d   : > { %v662_v12 = vmul.f32 1.442695, %v661_v11  ;;  %v416_v13 = vsel %vm240_vm1, %v961_v10, 0.0 }
 0x37e   : > { %417 = vadd.xlane.f32.xlu0 %v416_v13  ;;  %v423_v14 = vpop.permute.xlu1 %422 }
 0x37f   : > { %964 = vpow2.f32 %v662_v12  ;;  %v428_v15 = vsel %vm307_vm3, %v423_v14, 0 }
 0x380   : > { %883 = vmatpush3.bf16.msra.mxu0 %v428_v15 }
 0x381   : > { %894 = vmatprep.subr.bf16.mxu0 %v996_v0 }
 0x384   : > { %v963_v16 = vpop.eup %962 }
 0x385   : > { %v540_v17 = vsel %vm240_vm1, %v963_v16, 0.0 }
 0x386   : > { %541 = vadd.xlane.f32.xlu1 %v540_v17 }
 0x38c   : > { %v965_v18 = vpop.eup %964 }
 0x38d   : > { %v664_v20 = vsel %vm240_vm1, %v965_v18, 0.0 }
 0x38e   : > { %665 = vadd.xlane.f32.xlu0 %v664_v20 }
 0x397   : > { %670 = vrot.lane.b32.xlu1 %v1091_v21, %s1004_s4 }
 0x3a4   : > { %546 = vrot.lane.b32.xlu0 %v1086_v19, %s1005_s5 }
 0x407   : > { %v418_v22 = vpop.xlane.xlu0 %417 }
 0x408   : > { %966 = vrcp.f32 %v418_v22 }
 0x40f   : > { %v542_v23 = vpop.xlane.xlu1 %541 }
 0x410   : > { %968 = vrcp.f32 %v542_v23 }
 0x413   : > { %v671_v19 = vpop.permute.xlu1 %670 }
 0x414   : > { %v676_v32 = vsel %vm307_vm3, %v671_v19, 0 }
 0x415   : > { %v967_v24 = vpop.eup %966 }
 0x416   : > { %v420_v25 = vmul.f32 %v967_v24, %v961_v10 }
 0x417   : > { %v666_v26 = vpop.xlane.xlu0 %665 }
 0x418   : > { %970 = vrcp.f32 %v666_v26  ;;  %v421_v27 = vpack.c.bf16 %v420_v25, %v420_v25 }
 0x41a   : > { %885 = vmatmul.mubr.msk.bf16.vlgmr.msra.gmra.mxu0 %vm240_vm1, %v421_v27 }
 0x41b   : > { %v547_v28 = vpop.permute.xlu0 %546  ;;  %896 = vmatprep.mubr.msk.bf16.mxu0 %vm997_vm0, %v996_v0 }
 0x41c   : > { %v552_v21 = vsel %vm307_vm3, %v547_v28, 0 }
 0x41d   : > { %v969_v29 = vpop.eup %968  ;;  %895 = vmatpush3.bf16.msra.mxu0 %v552_v21 }
 0x41e   : > { %v544_v30 = vmul.f32 %v969_v29, %v963_v16  ;;  %906 = vmatprep.subr.bf16.mxu0 %v996_v0 }
 0x420   : > { %v545_v31 = vpack.c.bf16 %v544_v30, %v544_v30 }
 0x422   : > { %897 = vmatmul.mubr.msk.bf16.vlgmr.msra.gmra.mxu0 %vm240_vm1, %v545_v31 }
 0x423   : > { %907 = vmatpush3.bf16.msra.mxu0 %v676_v32  ;;  %908 = vmatprep.mubr.msk.bf16.mxu0 %vm997_vm0, %v996_v0 }
 0x425   : > { %v971_v33 = vpop.eup %970 }
 0x426   : > { %v668_v34 = vmul.f32 %v971_v33, %v965_v18 }
 0x428   : > { %v669_v35 = vpack.c.bf16 %v668_v34, %v668_v34 }
 0x42a   : > { %909 = vmatmul.mubr.msk.bf16.vlgmr.msra.gmra.mxu0 %vm240_vm1, %v669_v35 }
 0x4da   : > { %v464_v36 = vpop.f32.mrf.mxu0 }
 0x4db   : > { %471 = vrot.lane.b32.xlu1 %v464_v36, %s1006_s6 }
 0x4dc   : > { %v886_v37 = vpop.f32.mrf.mxu0 }
 0x4de   : > { %v467_v38 = vpop.f32.mrf.mxu0 }
 0x4e0   : > { %v887_v39 = vpop.f32.mrf.mxu0 }
 0x4e2   : > { %v588_v40 = vpop.f32.mrf.mxu0 }
 0x4e3   : > { %595 = vrot.lane.b32.xlu0 %v588_v40, %s1007_s7 }
 0x4e4   : > { %v898_v41 = vpop.f32.mrf.mxu0 }
 0x4e6   : > { %v591_v42 = vpop.f32.mrf.mxu0 }
 0x4e8   : > { %v899_v43 = vpop.f32.mrf.mxu0 }
 0x4ea   : > { %v712_v44 = vpop.f32.mrf.mxu0 }
 0x4eb   : > { %719 = vrot.lane.b32.xlu1 %v712_v44, %s1008_s8 }
 0x4ec   : > { %v910_v0 = vpop.f32.mrf.mxu0 }
 0x4ee   : > { %v715_v45 = vpop.f32.mrf.mxu0 }
 0x4f0   : > { %v911_v46 = vpop.f32.mrf.mxu0 }
 0x54d   : > { %v472_v47 = vpop.permute.xlu1 %471 }
 0x54e   : > { %475 = vst.msk [vmem:[#allocation2] sm:$0xff] %vm474_vm4, %v472_v47 }
 0x555   : > { %v596_v48 = vpop.permute.xlu0 %595 }
 0x556   : > { %599 = vst.msk [vmem:[#allocation2] sm:$0xff] %vm598_vm5, %v596_v48 }
 0x55d   : > { %v720_v49 = vpop.permute.xlu1 %719 }
 0x55e   : > { %723 = vst.msk [vmem:[#allocation2] sm:$0xff] %vm722_vm6, %v720_v49 }
 0x565   : > { %v724_v50 = vld [vmem:[#allocation2] sm:$0xff] }
 0x566   : > { %v725_v51 = vpack.c.bf16 %v724_v50, %v724_v50 }
 0x568   : > { %727 = vst.msk [vmem:[%s227_s11] sm:$0xf] %vm726_vm7, %v725_v51 }
 0x569 PF: > { %s13_s14 = sadd.s32 1, %s994_s14   ;;  %s1156_s12 = smov %s990_s13 }
 0x56a   : > { %p10_p5 = scmp.ge.s32.totalorder %s13_s14, 4   ;;  %s1157_s13 = smov %s1159_s15 }
 0x56c   :  { %12 = sbr.rel (!%p10_p5) target bundleno = 2 (0x2), region = 68 }

// kernel: decoder_layer_forward.15
= control target key start
LH: loop header
LB: loop body
LE: loop exit
PB: predicated region body
PF: predicated region fallthrough
CT: control target
= control target key end

     0   :  { %vm34_vm0 = vcmask 261120   ;;  %s499_s0 = inlined_call_operand.vmem [shape: f32[16,32], index: 0, kind: input, shape index: {}]   ;;  %s500_s1 = inlined_call_operand.vmem [shape: f32[1,32], index: 1, kind: input, shape index: {}]   ;;  %s501_s2 = inlined_call_operand.vmem [shape: f32[1,32], index: 2, kind: input, shape index: {}]   ;;  %s502_s3 = inlined_call_operand.vmem [shape: bf16[32,64], index: 3, kind: input, shape index: {}]   ;;  %s503_s4 = inlined_call_operand.vmem [shape: f32[1,64], index: 4, kind: input, shape index: {}]   ;;  %s504_s5 = inlined_call_operand.vmem [shape: bf16[64,32], index: 5, kind: input, shape index: {}]   ;;  %s505_s6 = inlined_call_operand.vmem [shape: f32[1,32], index: 6, kind: input, shape index: {}]   ;;  %s506_s7 = inlined_call_operand.hbm [shape: f32[16,32], index: 7, kind: output, shape index: {}]  }
   0x1   :  { %v442_v0 = vld [vmem:[%s499_s0] sm:$0xff]  ;;  %v447_v1 = vld [vmem:[%s499_s0 + $0x8] sm:$0xff] }
   0x2   :  { %v35_v2 = vsel %vm34_vm0, %v442_v0, 0.0  ;;  %v38_v3 = vsel %vm34_vm0, %v447_v1, 0.0 }
   0x3   :  { %36 = vadd.xlane.f32.xlu0 %v35_v2 }
   0x4   :  { %12 = vsyncpa [#allocation5], 0  ;;  %v357_v14 = vld [vmem:[%s502_s3 + $0x8] sm:$0xff]   ;;  %v394_v15 = vmov 0.0   ;;  %vm395_vm1 = vmmov 0   ;;  %v358_v16 = vld [vmem:[%s502_s3] sm:$0xff]  }
   0x5   :  { %332 = vmatprep.subr.bf16.mxu0 %v394_v15  ;;  %108 = vst.msk [vmem:[#allocation3] sm:$0xff] %vm34_vm0, %v394_v15  ;;  %109 = vst.msk [vmem:[#allocation3 + $0x8] sm:$0xff] %vm34_vm0, %v394_v15  ;;  %336 = vmatprep.mubr.msk.bf16.mxu0 %vm395_vm1, %v394_v15  ;;  %v360_v17 = vld [vmem:[%s504_s5 + $0x18] sm:$0xff]   ;;  %v307_v35 = vld [vmem:[%s500_s1] ss:$0 sm:$0xff]  ;;  %vm105_vm6 = vcmask 257024  }
   0x6   :  { %333 = vmatpush3.bf16.msra.mxu0 %v357_v14  ;;  %340 = vmatprep.subr.bf16.mxu1 %v394_v15  ;;  %v308_v37 = vld [vmem:[%s501_s2] ss:$0 sm:$0xff]  ;;  %v361_v47 = vld [vmem:[%s504_s5 + $0x10] sm:$0xff]   ;;  %v362_v48 = vld [vmem:[%s504_s5 + $0x8] sm:$0xff]   ;;  %vm222_vm7 = vcmask 523264   ;;  %s396_s19 = smov [#allocation4]  }
   0x7   :  { %39 = vadd.xlane.f32.xlu0 %v38_v3  ;;  %334 = vmatprep.subr.bf16.mxu0 %v394_v15  ;;  %v363_v49 = vld [vmem:[%s504_s5] sm:$0xff]   ;;  %s296_s20 = sshll.u32 %s396_s19, 4  ;;  %s297_s20 = int_to_ptr.vmem [resolvable:$true] %s296_s20 }
   0x8   :  { %348 = vmatprep.mubr.msk.bf16.mxu1 %vm395_vm1, %v394_v15  ;;  %341 = vmatpush3.bf16.msra.mxu1 %v360_v17  ;;  %v311_v50 = vld [vmem:[%s503_s4] ss:$0 sm:$0xff]  ;;  %s372_s21 = scalar_lea.vmem %s297_s20, 256  ;;  %p377_p1 = scmp.lt.s32.totalorder %s297_s20, %s297_s20 }
   0x9   :  { %342 = vmatprep.subr.bf16.mxu1 %v394_v15  ;;  %p373_p0 = scmp.ne.s32.totalorder %s297_s20, %s372_s21  ;;  %p378_p2 = scmp.lt.s32.totalorder %s372_s21, %s372_s21 }
   0xa   :  { %335 = vmatpush3.bf16.msra.mxu0 %v358_v16 }
   0xb   :  { %p379_p3 = por %p378_p2, %p377_p1 }
   0xc   :  { %343 = vmatpush3.bf16.msra.mxu1 %v361_v47  ;;  %v187_v60 = vld [vmem:[#allocation3] sm:$0xff]  ;;  %v188_v2 = vld [vmem:[#allocation3 + $0x8] sm:$0xff] }
   0xd   :  { %344 = vmatprep.subr.bf16.mxu1 %v394_v15  ;;  %p380_p4 = pnand %p379_p3, %p373_p0 }
  0x10   :  { %345 = vmatpush3.bf16.msra.mxu1 %v362_v48 }
  0x11   :  { %346 = vmatprep.subr.bf16.mxu1 %v394_v15 }
  0x14   :  { %347 = vmatpush3.bf16.msra.mxu1 %v363_v49 }
  0x8c   :  { %v37_v4 = vpop.xlane.xlu0 %36 }
  0x8d   :  { %v42_v5 = vmul.f32 0.03125, %v37_v4 }
  0x8f   :  { %v44_v6 = vsub.f32 %v442_v0, %v42_v5 }
  0x90   :  { %v40_v7 = vpop.xlane.xlu0 %39 }
  0x91   :  { %v43_v8 = vmul.f32 0.03125, %v40_v7  ;;  %v46_v9 = vmul.f32 %v44_v6, %v44_v6 }
  0x93   :  { %v45_v10 = vsub.f32 %v447_v1, %v43_v8  ;;  %v48_v11 = vsel %vm34_vm0, %v46_v9, 0.0 }
  0x94   :  { %49 = vadd.xlane.f32.xlu1 %v48_v11 }
  0x95   :  { %v47_v12 = vmul.f32 %v45_v10, %v45_v10 }
  0x97   :  { %v51_v13 = vsel %vm34_vm0, %v47_v12, 0.0 }
  0x98   :  { %52 = vadd.xlane.f32.xlu1 %v51_v13 }
 0x11d   :  { %v50_v18 = vpop.xlane.xlu1 %49 }
 0x11e   :  { %v55_v19 = vmul.f32 0.032258064, %v50_v18 }
 0x120   :  { %364 = vrsqrt.f32 %v55_v19  ;;  %vm59_vm2 = vcmp.eq.f32.partialorder %v55_v19, inf  ;;  %v62_v24 = vand.u32 2147483648, %v55_v19  ;;  %vm61_vm3 = vcmp.eq.f32.partialorder %v55_v19, 0.0 }
 0x121   :  { %v53_v20 = vpop.xlane.xlu1 %52 }
 0x122   :  { %v56_v21 = vmul.f32 0.032258064, %v53_v20 }
 0x124   :  { %366 = vrsqrt.f32 %v56_v21  ;;  %vm66_vm4 = vcmp.eq.f32.partialorder %v56_v21, inf  ;;  %v69_v30 = vand.u32 2147483648, %v56_v21  ;;  %vm68_vm5 = vcmp.eq.f32.partialorder %v56_v21, 0.0 }
 0x12d   :  { %v365_v22 = vpop.eup %364 }
 0x12e   :  { %v58_v23 = vmul.f32 %v365_v22, %v55_v19 }
 0x130   :  { %v60_v25 = vsel %vm59_vm2, %v55_v19, %v58_v23 }
 0x131   :  { %v367_v26 = vpop.eup %366  ;;  %v63_v27 = vsel %vm61_vm3, %v62_v24, %v60_v25 }
 0x132   :  { %v71_v28 = vadd.f32 1e-06, %v63_v27  ;;  %v65_v29 = vmul.f32 %v367_v26, %v56_v21 }
 0x134   :  { %368 = vrcp.f32 %v71_v28  ;;  %v67_v31 = vsel %vm66_vm4, %v56_v21, %v65_v29 }
 0x135   :  { %v70_v32 = vsel %vm68_vm5, %v69_v30, %v67_v31 }
 0x136   :  { %v72_v33 = vadd.f32 1e-06, %v70_v32 }
 0x138   :  { %370 = vrcp.f32 %v72_v33 }
 0x141   :  { %v369_v34 = vpop.eup %368 }
 0x142   :  { %v78_v36 = vmul.f32 %v369_v34, %v44_v6  ;;  %v321_v6 = vld [vmem:[%s505_s6] ss:$0 sm:$0xff] }
 0x144   :  { %v86_v38 = vmul.f32 %v307_v35, %v78_v36 }
 0x145   :  { %v371_v39 = vpop.eup %370 }
 0x146   :  { %v95_v40 = vadd.f32 %v308_v37, %v86_v38  ;;  %v79_v41 = vmul.f32 %v371_v39, %v45_v10 }
 0x148   :  { %v322_v42 = vpack.c.bf16 %v95_v40, %v95_v40  ;;  %v87_v43 = vmul.f32 %v307_v35, %v79_v41 }
 0x14a   :  { %v96_v44 = vadd.f32 %v308_v37, %v87_v43  ;;  %106 = vst.msk [vmem:[#allocation2] sm:$0xf] %vm105_vm6, %v322_v42 }
 0x14c   :  { %v323_v45 = vpack.c.bf16 %v96_v44, %v96_v44 }
 0x14e   :  { %107 = vst.msk [vmem:[#allocation2 + $0x4] sm:$0xf] %vm105_vm6, %v323_v45 }
 0x155   :  { %v359_v46 = vld [vmem:[#allocation2] sm:$0xff]  }
 0x156   :  { %337 = vmatmul.mubr.msk.bf16.vlgmr.msra.gmra.mxu0 %vm34_vm0, %v359_v46 }
 0x216   :  { %v178_v51 = vpop.f32.mrf.mxu0 }
 0x217   :  { %v179_v53 = vadd.f32 %v311_v50, %v178_v51 }
 0x218   :  { %v338_v52 = vpop.f32.mrf.mxu0 }
 0x219   :  { %v185_v57 = vmax.f32 %v179_v53, 0.0 }
 0x21a   :  { %v181_v54 = vpop.f32.mrf.mxu0 }
 0x21b   :  { %v182_v55 = vadd.f32 %v311_v50, %v181_v54 }
 0x21c   :  { %v339_v56 = vpop.f32.mrf.mxu0 }
 0x21d   :  { %v186_v58 = vmax.f32 %v182_v55, 0.0 }
 0x21f   :  { %v189_v59 = vpack.c.bf16 %v186_v58, %v185_v57 }
 0x221   :  { %349 = vmatmul.mubr.msk.bf16.vlgmr.msra.gmra.mxu1 %vm222_vm7, %v189_v59 }
 0x2e1   :  { %v260_v61 = vpop.f32.mrf.mxu1 }
 0x2e2   :  { %v267_v62 = vadd.f32 %v260_v61, %v187_v60 }
 0x2e3   :  { %v350_v63 = vpop.f32.mrf.mxu1 }
 0x2e4   :  { %269 = vst.msk [vmem:[#allocation3] sm:$0xff] %vm34_vm0, %v267_v62 }
 0x2e5   :  { %v263_v3 = vpop.f32.mrf.mxu1 }
 0x2e6   :  { %v268_v4 = vadd.f32 %v263_v3, %v188_v2 }
 0x2e7   :  { %v351_v5 = vpop.f32.mrf.mxu1 }
 0x2e8   :  { %270 = vst.msk [vmem:[#allocation3 + $0x8] sm:$0xff] %vm34_vm0, %v268_v4 }
 0x2eb   :  { %v274_v7 = vld [vmem:[#allocation3] sm:$0xff] }
 0x2ec   :  { %v283_v8 = vadd.f32 %v321_v6, %v274_v7 }
 0x2ee   :  { %v287_v9 = vadd.f32 %v283_v8, %v442_v0 }
 0x2ef   :  { %v275_v10 = vld [vmem:[#allocation3 + $0x8] sm:$0xff] }
 0x2f0   :  { %v284_v11 = vadd.f32 %v321_v6, %v275_v10  ;;  %289 = vst.msk [vmem:[#allocation4] sm:$0xff] %vm34_vm0, %v287_v9 }
 0x2f2   :  { %v288_v12 = vadd.f32 %v284_v11, %v447_v1 }
 0x2f4   :  { %290 = vst.msk [vmem:[#allocation4 + $0x8] sm:$0xff] %vm34_vm0, %v288_v12 }
 0x2f5   :  { %383 = shalt.err (!%p380_p4)
}
 0x2f6   :  { %s397_s6 = smov 128   ;;  %s398_s22 = smov 8  }
 0x2f7   :  { %302 = dma.vmem_to_hbm [thread:$0]  %s297_s20, 256, %s506_s7, [#allocation5], %s397_s6, %s397_s6, %s398_s22  }
 0x2f8   :  { %392 = dma.done.wait [#allocation5], 256  }
 0x2f9   :  { %393 = vsyncadd [#allocation5], 4294967040 }
 0x2fa   :  { %306 = vsyncpa [#allocation5], 1 }

</bundles_post_ra>
